<compile_context>
chip_gen: v5e
topology: v5e:2x2
jax: 0.10.0
libtpu: 0.0.40
codegen_flags: <defaults>
</compile_context>

<pallas_src>
import jax
import jax.numpy as jnp
from jax.experimental import pallas as pl
from jax.experimental.pallas import tpu as pltpu

BN_EPS = 1e-5    # PyTorch BatchNorm1d default eps
LANE = 128       # TPU lane width — pad narrow feature dims up to this
PAD_IN = 128     # padded fc1 input width (state_size + all_actions_size <= 128)


def _critic_kernel(x_ref,
                   w1_ref, b1_ref, gamma_ref, beta_ref,
                   w2_ref, b2_ref,
                   w3_ref, b3_ref,
                   w4_ref, b4_ref,
                   w5_ref, b5_ref,
                   out_ref):
    bf16 = jnp.bfloat16
    f32 = jnp.float32

    # fc1 + ReLU — single MXU pass on the lane-dense padded bf16 input:
    #   concat(state, actions, zeros) @ pad(W1)  ==  concat(state, actions) @ W1
    h = jnp.dot(x_ref[...], w1_ref[...],
                preferred_element_type=f32) + b1_ref[...]
    h = jnp.maximum(h, 0.0)

    # BatchNorm1d (training mode, biased batch statistics) folded into one
    # per-column scale/shift.  f32 accumulation throughout; hc = h - mean is
    # never materialized.
    inv_b = 1.0 / h.shape[0]
    s1 = jnp.sum(h, axis=0, keepdims=True)          # (1, 256) column sums
    s2 = jnp.sum(h * h, axis=0, keepdims=True)      # (1, 256) column sum of squares
    mean = s1 * inv_b
    var = s2 * inv_b - mean * mean                  # biased variance (training BN)
    scale = gamma_ref[...] * jax.lax.rsqrt(var + BN_EPS)
    shift = beta_ref[...] - mean * scale
    h = h * scale + shift

    # fc2 + ReLU  (256 -> 128); bf16 at the MXU, f32 accumulate + elementwise.
    h = jnp.dot(h.astype(bf16), w2_ref[...],
                preferred_element_type=f32) + b2_ref[...]
    h = jnp.maximum(h, 0.0)

    # fc3 + ReLU  (128 -> 64, zero-padded to 128 lanes)
    h = jnp.dot(h.astype(bf16), w3_ref[...],
                preferred_element_type=f32) + b3_ref[...]
    h = jnp.maximum(h, 0.0)

    # fc4 + ReLU  (64 -> 32, both sides zero-padded to 128 lanes)
    h = jnp.dot(h.astype(bf16), w4_ref[...],
                preferred_element_type=f32) + b4_ref[...]
    h = jnp.maximum(h, 0.0)

    # fc5 (32 -> 1, zero-padded to 128 lanes; real output lives in column 0)
    out_ref[...] = jnp.dot(h.astype(bf16), w5_ref[...],
                           preferred_element_type=f32) + b5_ref[...]


def critic_forward(state, all_actions, packed):
    """state: (B, state_size), all_actions: (B, all_actions_size) -> (B, 1)."""
    B = state.shape[0]
    in_dim = state.shape[1] + all_actions.shape[1]
    assert in_dim <= PAD_IN

    # One cheap fused concat/pad/cast in the wrapper -> lane-dense bf16 slab.
    x = jnp.concatenate(
        [state.astype(jnp.float32), all_actions.astype(jnp.float32)], axis=1)
    x = jnp.pad(x, ((0, 0), (0, PAD_IN - in_dim))).astype(jnp.bfloat16)

    operands = (
        x,
        packed["w1"], packed["b1"], packed["gamma"], packed["beta"],
        packed["w2"], packed["b2"],
        packed["w3"], packed["b3"],
        packed["w4"], packed["b4"],
        packed["w5"], packed["b5"],
    )

    # Advisory cost estimate (padded matmul dims; BN / elementwise negligible).
    flops = 2 * B * (PAD_IN * 256 + 256 * 128 + 128 * 128 * 3)
    weight_bytes = (PAD_IN * 256 + 256 * 128 + 3 * 128 * 128) * 2     # bf16 weights
    vec_bytes = (3 * 256 + 4 * 128) * 4                               # biases/gamma/beta f32
    io_bytes = B * PAD_IN * 2 + B * LANE * 4                          # input bf16 + output f32
    cost = pl.CostEstimate(
        flops=int(flops),
        transcendentals=256,                                          # rsqrt over 256 columns
        bytes_accessed=int(weight_bytes + vec_bytes + io_bytes),
    )

    vmem_spec = pl.BlockSpec(memory_space=pltpu.MemorySpace.VMEM)
    out_padded = pl.pallas_call(
        _critic_kernel,
        out_shape=jax.ShapeDtypeStruct((B, LANE), jnp.float32),
        in_specs=[vmem_spec] * len(operands),
        out_specs=vmem_spec,
        compiler_params=pltpu.CompilerParams(vmem_limit_bytes=32 * 1024 * 1024),
        cost_estimate=cost,
    )(*operands)
    return out_padded[:, :1]   # drop the zero lane padding


def init_params(key, state_size, all_actions_size):
    """Deterministic init matching the PyTorch module's shapes / init ranges.

    Weights are stored transposed vs. PyTorch, i.e. (in_features, out_features).
    Note: the reference reset_parameters() uses hidden_init(self.fc1) for
    fc1..fc4, i.e. lim = 1/sqrt(fc1.weight.size(0)) = 1/sqrt(256) for all of
    them; fc5 ~ U(-3e-3, 3e-3).  Biases keep PyTorch Linear's default
    U(-1/sqrt(fan_in), 1/sqrt(fan_in)).
    """
    in_dim = state_size + all_actions_size
    dims = [in_dim, 256, 128, 64, 32, 1]
    lim_hidden = 1.0 / jnp.sqrt(256.0)
    w_lims = [lim_hidden, lim_hidden, lim_hidden, lim_hidden, 3e-3]

    params = {}
    keys = jax.random.split(key, 10)
    k_it = iter(keys)
    for i in range(5):
        din, dout = dims[i], dims[i + 1]
        wl = w_lims[i]
        bl = 1.0 / jnp.sqrt(float(din))
        params[f"w{i+1}"] = jax.random.uniform(
            next(k_it), (din, dout), jnp.float32, -wl, wl)
        params[f"b{i+1}"] = jax.random.uniform(
            next(k_it), (1, dout), jnp.float32, -bl, bl)

    # BatchNorm1d affine params: gamma=1, beta=0
    params["gamma"] = jnp.ones((1, 256), jnp.float32)
    params["beta"] = jnp.zeros((1, 256), jnp.float32)
    return params


def _pad2d(a, rows, cols):
    return jnp.pad(a, ((0, rows - a.shape[0]), (0, cols - a.shape[1])))


def pack_params(params):
    """One-time packing: zero-pad to lane-dense shapes, weights in bf16."""
    bf16 = jnp.bfloat16
    return {
        "w1": _pad2d(params["w1"], PAD_IN, 256).astype(bf16),   # (in_dim,256)->(128,256)
        "b1": params["b1"],                                      # (1, 256) f32
        "gamma": params["gamma"],                                # (1, 256) f32
        "beta": params["beta"],                                  # (1, 256) f32
        "w2": params["w2"].astype(bf16),                         # (256, 128)
        "b2": params["b2"],                                      # (1, 128) f32
        "w3": _pad2d(params["w3"], 128, LANE).astype(bf16),      # (128, 64) -> (128, 128)
        "b3": _pad2d(params["b3"], 1, LANE),                     # (1, 64)   -> (1, 128)
        "w4": _pad2d(params["w4"], LANE, LANE).astype(bf16),     # (64, 32)  -> (128, 128)
        "b4": _pad2d(params["b4"], 1, LANE),                     # (1, 32)   -> (1, 128)
        "w5": _pad2d(params["w5"], LANE, LANE).astype(bf16),     # (32, 1)   -> (128, 128)
        "b5": _pad2d(params["b5"], 1, LANE),                     # (1, 1)    -> (1, 128)
    }


if __name__ == "__main__":
    key = jax.random.PRNGKey(0)
    k_s, k_a, k_p = jax.random.split(key, 3)

    batch = 256            # fill MXU rows / amortize launch overhead; BN needs batch>1
    state_size = 24        # Tennis env observation size per agent
    all_actions_size = 4   # 2 agents x 2-dim continuous action

    state = jax.random.normal(k_s, (batch, state_size), jnp.float32)
    all_actions = jax.random.normal(k_a, (batch, all_actions_size), jnp.float32)

    params = init_params(k_p, state_size, all_actions_size)
    packed = pack_params(params)   # one-time: pad + bf16

    out = critic_forward(state, all_actions, packed)
    jax.block_until_ready(out)

    assert out.shape == (batch, 1) and out.dtype == jnp.float32
    assert bool(jnp.all(jnp.isfinite(out)))
    print("KERNEL_OK")
</pallas_src>

<mosaic_0001>
module attributes {stable_mosaic.version = 11 : i64} {
  func.func @_critic_kernel(%arg0: memref<256x128xbf16, #tpu.memory_space<vmem>>, %arg1: memref<128x256xbf16, #tpu.memory_space<vmem>>, %arg2: memref<1x256xf32, #tpu.memory_space<vmem>>, %arg3: memref<1x256xf32, #tpu.memory_space<vmem>>, %arg4: memref<1x256xf32, #tpu.memory_space<vmem>>, %arg5: memref<256x128xbf16, #tpu.memory_space<vmem>>, %arg6: memref<1x128xf32, #tpu.memory_space<vmem>>, %arg7: memref<128x128xbf16, #tpu.memory_space<vmem>>, %arg8: memref<1x128xf32, #tpu.memory_space<vmem>>, %arg9: memref<128x128xbf16, #tpu.memory_space<vmem>>, %arg10: memref<1x128xf32, #tpu.memory_space<vmem>>, %arg11: memref<128x128xbf16, #tpu.memory_space<vmem>>, %arg12: memref<1x128xf32, #tpu.memory_space<vmem>>, %arg13: memref<256x128xf32, #tpu.memory_space<vmem>>) attributes {dimension_semantics = [], scalar_prefetch = 0 : i64, scratch_operands = 0 : i64, tpu.core_type = #tpu.core_type<tc>} {
    %c0 = arith.constant 0 : index
    %c0_0 = arith.constant 0 : index
    %0 = vector.load %arg0[%c0, %c0_0] : memref<256x128xbf16, #tpu.memory_space<vmem>>, vector<256x128xbf16>
    %c0_1 = arith.constant 0 : index
    %c0_2 = arith.constant 0 : index
    %1 = vector.load %arg1[%c0_1, %c0_2] : memref<128x256xbf16, #tpu.memory_space<vmem>>, vector<128x256xbf16>
    %cst = arith.constant dense<0.000000e+00> : vector<256x256xf32>
    %2 = tpu.matmul %0, %1, %cst {dimension_numbers = #tpu.dot_dimension_numbers<[1], [0], [0], [1], [0, 0, 1, 1], [], []>} : vector<256x128xbf16>, vector<128x256xbf16>, vector<256x256xf32> -> vector<256x256xf32>
    %c0_3 = arith.constant 0 : index
    %c0_4 = arith.constant 0 : index
    %3 = vector.load %arg2[%c0_3, %c0_4] : memref<1x256xf32, #tpu.memory_space<vmem>>, vector<1x256xf32>
    %4 = vector.broadcast %3 : vector<1x256xf32> to vector<256x256xf32>
    %5 = arith.addf %2, %4 : vector<256x256xf32>
    %cst_5 = arith.constant 0.000000e+00 : f32
    %6 = vector.broadcast %cst_5 : f32 to vector<256x256xf32>
    %7 = arith.maximumf %5, %6 : vector<256x256xf32>
    %cst_6 = arith.constant dense<0.000000e+00> : vector<256xf32>
    %8 = vector.multi_reduction <add>, %7, %cst_6 [0] : vector<256x256xf32> to vector<256xf32>
    %9 = vector.shape_cast %8 : vector<256xf32> to vector<1x256xf32>
    %10 = arith.mulf %7, %7 : vector<256x256xf32>
    %cst_7 = arith.constant dense<0.000000e+00> : vector<256xf32>
    %11 = vector.multi_reduction <add>, %10, %cst_7 [0] : vector<256x256xf32> to vector<256xf32>
    %12 = vector.shape_cast %11 : vector<256xf32> to vector<1x256xf32>
    %cst_8 = arith.constant 3.906250e-03 : f32
    %13 = vector.broadcast %cst_8 : f32 to vector<1x256xf32>
    %14 = arith.mulf %9, %13 : vector<1x256xf32>
    %cst_9 = arith.constant 3.906250e-03 : f32
    %15 = vector.broadcast %cst_9 : f32 to vector<1x256xf32>
    %16 = arith.mulf %12, %15 : vector<1x256xf32>
    %17 = arith.mulf %14, %14 : vector<1x256xf32>
    %18 = arith.subf %16, %17 : vector<1x256xf32>
    %c0_10 = arith.constant 0 : index
    %c0_11 = arith.constant 0 : index
    %19 = vector.load %arg3[%c0_10, %c0_11] : memref<1x256xf32, #tpu.memory_space<vmem>>, vector<1x256xf32>
    %cst_12 = arith.constant 9.99999974E-6 : f32
    %20 = vector.broadcast %cst_12 : f32 to vector<1x256xf32>
    %21 = arith.addf %18, %20 : vector<1x256xf32>
    %22 = math.rsqrt %21 : vector<1x256xf32>
    %23 = arith.mulf %19, %22 : vector<1x256xf32>
    %c0_13 = arith.constant 0 : index
    %c0_14 = arith.constant 0 : index
    %24 = vector.load %arg4[%c0_13, %c0_14] : memref<1x256xf32, #tpu.memory_space<vmem>>, vector<1x256xf32>
    %25 = arith.mulf %14, %23 : vector<1x256xf32>
    %26 = arith.subf %24, %25 : vector<1x256xf32>
    %27 = vector.broadcast %23 : vector<1x256xf32> to vector<256x256xf32>
    %28 = arith.mulf %7, %27 : vector<256x256xf32>
    %29 = vector.broadcast %26 : vector<1x256xf32> to vector<256x256xf32>
    %30 = arith.addf %28, %29 : vector<256x256xf32>
    %31 = arith.truncf %30 : vector<256x256xf32> to vector<256x256xbf16>
    %c0_15 = arith.constant 0 : index
    %c0_16 = arith.constant 0 : index
    %32 = vector.load %arg5[%c0_15, %c0_16] : memref<256x128xbf16, #tpu.memory_space<vmem>>, vector<256x128xbf16>
    %cst_17 = arith.constant dense<0.000000e+00> : vector<256x128xf32>
    %33 = tpu.matmul %31, %32, %cst_17 {dimension_numbers = #tpu.dot_dimension_numbers<[1], [0], [0], [1], [0, 0, 1, 1], [], []>} : vector<256x256xbf16>, vector<256x128xbf16>, vector<256x128xf32> -> vector<256x128xf32>
    %c0_18 = arith.constant 0 : index
    %c0_19 = arith.constant 0 : index
    %34 = vector.load %arg6[%c0_18, %c0_19] : memref<1x128xf32, #tpu.memory_space<vmem>>, vector<1x128xf32>
    %35 = vector.broadcast %34 : vector<1x128xf32> to vector<256x128xf32>
    %36 = arith.addf %33, %35 : vector<256x128xf32>
    %cst_20 = arith.constant 0.000000e+00 : f32
    %37 = vector.broadcast %cst_20 : f32 to vector<256x128xf32>
    %38 = arith.maximumf %36, %37 : vector<256x128xf32>
    %39 = arith.truncf %38 : vector<256x128xf32> to vector<256x128xbf16>
    %c0_21 = arith.constant 0 : index
    %c0_22 = arith.constant 0 : index
    %40 = vector.load %arg7[%c0_21, %c0_22] : memref<128x128xbf16, #tpu.memory_space<vmem>>, vector<128x128xbf16>
    %cst_23 = arith.constant dense<0.000000e+00> : vector<256x128xf32>
    %41 = tpu.matmul %39, %40, %cst_23 {dimension_numbers = #tpu.dot_dimension_numbers<[1], [0], [0], [1], [0, 0, 1, 1], [], []>} : vector<256x128xbf16>, vector<128x128xbf16>, vector<256x128xf32> -> vector<256x128xf32>
    %c0_24 = arith.constant 0 : index
    %c0_25 = arith.constant 0 : index
    %42 = vector.load %arg8[%c0_24, %c0_25] : memref<1x128xf32, #tpu.memory_space<vmem>>, vector<1x128xf32>
    %43 = vector.broadcast %42 : vector<1x128xf32> to vector<256x128xf32>
    %44 = arith.addf %41, %43 : vector<256x128xf32>
    %cst_26 = arith.constant 0.000000e+00 : f32
    %45 = vector.broadcast %cst_26 : f32 to vector<256x128xf32>
    %46 = arith.maximumf %44, %45 : vector<256x128xf32>
    %47 = arith.truncf %46 : vector<256x128xf32> to vector<256x128xbf16>
    %c0_27 = arith.constant 0 : index
    %c0_28 = arith.constant 0 : index
    %48 = vector.load %arg9[%c0_27, %c0_28] : memref<128x128xbf16, #tpu.memory_space<vmem>>, vector<128x128xbf16>
    %cst_29 = arith.constant dense<0.000000e+00> : vector<256x128xf32>
    %49 = tpu.matmul %47, %48, %cst_29 {dimension_numbers = #tpu.dot_dimension_numbers<[1], [0], [0], [1], [0, 0, 1, 1], [], []>} : vector<256x128xbf16>, vector<128x128xbf16>, vector<256x128xf32> -> vector<256x128xf32>
    %c0_30 = arith.constant 0 : index
    %c0_31 = arith.constant 0 : index
    %50 = vector.load %arg10[%c0_30, %c0_31] : memref<1x128xf32, #tpu.memory_space<vmem>>, vector<1x128xf32>
    %51 = vector.broadcast %50 : vector<1x128xf32> to vector<256x128xf32>
    %52 = arith.addf %49, %51 : vector<256x128xf32>
    %cst_32 = arith.constant 0.000000e+00 : f32
    %53 = vector.broadcast %cst_32 : f32 to vector<256x128xf32>
    %54 = arith.maximumf %52, %53 : vector<256x128xf32>
    %55 = arith.truncf %54 : vector<256x128xf32> to vector<256x128xbf16>
    %c0_33 = arith.constant 0 : index
    %c0_34 = arith.constant 0 : index
    %56 = vector.load %arg11[%c0_33, %c0_34] : memref<128x128xbf16, #tpu.memory_space<vmem>>, vector<128x128xbf16>
    %cst_35 = arith.constant dense<0.000000e+00> : vector<256x128xf32>
    %57 = tpu.matmul %55, %56, %cst_35 {dimension_numbers = #tpu.dot_dimension_numbers<[1], [0], [0], [1], [0, 0, 1, 1], [], []>} : vector<256x128xbf16>, vector<128x128xbf16>, vector<256x128xf32> -> vector<256x128xf32>
    %c0_36 = arith.constant 0 : index
    %c0_37 = arith.constant 0 : index
    %58 = vector.load %arg12[%c0_36, %c0_37] : memref<1x128xf32, #tpu.memory_space<vmem>>, vector<1x128xf32>
    %59 = vector.broadcast %58 : vector<1x128xf32> to vector<256x128xf32>
    %60 = arith.addf %57, %59 : vector<256x128xf32>
    %c0_38 = arith.constant 0 : index
    %c0_39 = arith.constant 0 : index
    %61 = vector.load %arg13[%c0_38, %c0_39] : memref<256x128xf32, #tpu.memory_space<vmem>>, vector<256x128xf32>
    tpu.vector_store %arg13[%c0_38, %c0_39], %60 {strides = array<i32>} : memref<256x128xf32, #tpu.memory_space<vmem>>, vector<256x128xf32>,
    return
  }
}

</mosaic_0001>

<bundles_post_ra>
// kernel: tpu_custom_call.1
= control target key start
LH: loop header
LB: loop body
LE: loop exit
PB: predicated region body
PF: predicated region fallthrough
CT: control target
= control target key end

     0   :  { %18 = vsyncpa [#allocation3], 0  ;;  %s4061_s0 = inlined_call_operand.hbm [shape: bf16[256,128], index: 0, kind: input, shape index: {}]   ;;  %s4062_s1 = inlined_call_operand.hbm [shape: bf16[128,256], index: 1, kind: input, shape index: {}]   ;;  %s4063_s2 = inlined_call_operand.hbm [shape: f32[1,256], index: 2, kind: input, shape index: {}]   ;;  %s4064_s3 = inlined_call_operand.vmem [shape: f32[1,256], index: 3, kind: input, shape index: {}]   ;;  %s4065_s4 = inlined_call_operand.hbm [shape: f32[1,256], index: 4, kind: input, shape index: {}]   ;;  %s4066_s5 = inlined_call_operand.hbm [shape: bf16[256,128], index: 5, kind: input, shape index: {}]   ;;  %s4067_s6 = inlined_call_operand.vmem [shape: f32[1,128], index: 6, kind: input, shape index: {}]   ;;  %s4068_s7 = inlined_call_operand.hbm [shape: bf16[128,128], index: 7, kind: input, shape index: {}]   ;;  %s4069_s8 = inlined_call_operand.vmem [shape: f32[1,128], index: 8, kind: input, shape index: {}]   ;;  %s4070_s9 = inlined_call_operand.hbm [shape: bf16[128,128], index: 9, kind: input, shape index: {}]   ;;  %s4071_s10 = inlined_call_operand.vmem [shape: f32[1,128], index: 10, kind: input, shape index: {}]   ;;  %s4072_s11 = inlined_call_operand.hbm [shape: bf16[128,128], index: 11, kind: input, shape index: {}]   ;;  %s4073_s12 = inlined_call_operand.vmem [shape: f32[1,128], index: 12, kind: input, shape index: {}]   ;;  %s4074_s13 = inlined_call_operand.hbm [shape: f32[256,128], index: 13, kind: output, shape index: {}]  }
   0x1   :  { %19 = vsyncpa [#allocation6], 0 }
   0x2   :  { %20 = vsyncpa [#allocation9], 0 }
   0x3   :  { %21 = vsyncpa [#allocation12], 0 }
   0x4   :  { %22 = vsyncpa [#allocation15], 0  ;;  %s41_s27 = sshll.u32 %s4062_s1, 4  ;;  %s42_s27 = int_to_ptr.hbm [resolvable:$true] %s41_s27 }
   0x5   :  { %23 = vsyncpa [#allocation4], 0  ;;  %s2680_s28 = smov [#allocation5]   ;;  %s68_s15 = sshll.u32 %s4065_s4, 4  ;;  %s69_s15 = int_to_ptr.hbm [resolvable:$true] %s68_s15 }
   0x6   :  { %s43_s29 = sshll.u32 %s2680_s28, 4  ;;  %s2681_s16 = smov 128   ;;  %s44_s29 = int_to_ptr.vmem [resolvable:$true] %s43_s29 }
   0x7   :  { %s2682_s17 = smov 8   ;;  %s2683_s18 = smov [#allocation8]  }
   0x8   :  { %49 = dma.hbm_to_vmem [thread:$0]  %s42_s27, 2048, %s44_s29, [#allocation6], %s2681_s16, %s2681_s16, %s2682_s17  }
   0x9   :  { %s70_s19 = sshll.u32 %s2683_s18, 4  ;;  %s93_s21 = sshll.u32 %s4068_s7, 4  ;;  %s71_s19 = int_to_ptr.vmem [resolvable:$true] %s70_s19  ;;  %s94_s21 = int_to_ptr.hbm [resolvable:$true] %s93_s21 }
   0xa   :  { %73 = dma.hbm_to_vmem [thread:$0]  %s69_s15, 32, %s71_s19, [#allocation9]  }
   0xb   :  { %s2684_s22 = smov [#allocation11]   ;;  %s28_s25 = sshll.u32 %s4061_s0, 4  ;;  %s29_s25 = int_to_ptr.hbm [resolvable:$true] %s28_s25 }
   0xc   :  { %s95_s23 = sshll.u32 %s2684_s22, 4  ;;  %s2685_s26 = smov 64   ;;  %s96_s23 = int_to_ptr.vmem [resolvable:$true] %s95_s23 }
   0xd   :  { %s2686_s28 = smov 4   ;;  %s2687_s27 = smov [#allocation2]  }
   0xe   :  { %101 = dma.hbm_to_vmem [thread:$0]  %s94_s21, 1024, %s96_s23, [#allocation12], %s2685_s26, %s2685_s26, %s2686_s28  }
   0xf   :  { %s30_s29 = sshll.u32 %s2687_s27, 4  ;;  %s55_s7 = sshll.u32 %s4063_s2, 4  ;;  %s31_s29 = int_to_ptr.vmem [resolvable:$true] %s30_s29  ;;  %s56_s7 = int_to_ptr.hbm [resolvable:$true] %s55_s7 }
  0x10   :  { %36 = dma.hbm_to_vmem [thread:$0]  %s29_s25, 2048, %s31_s29, [#allocation3], %s2685_s26, %s2685_s26, %s2686_s28  }
  0x11   :  { %s78_s18 = sshll.u32 %s4066_s5, 4  ;;  %s2688_s19 = smov [#allocation7]   ;;  %s79_s18 = int_to_ptr.hbm [resolvable:$true] %s78_s18 }
  0x12   :  { %s57_s1 = sshll.u32 %s2688_s19, 4  ;;  %s2689_s20 = smov [#allocation10]   ;;  %s58_s1 = int_to_ptr.vmem [resolvable:$true] %s57_s1 }
  0x13   :  { %60 = dma.hbm_to_vmem [thread:$0]  %s56_s7, 32, %s58_s1, [#allocation6]  }
  0x14   :  { %s80_s21 = sshll.u32 %s2689_s20, 4  ;;  %s108_s2 = sshll.u32 %s4070_s9, 4  ;;  %s81_s21 = int_to_ptr.vmem [resolvable:$true] %s80_s21  ;;  %s109_s2 = int_to_ptr.hbm [resolvable:$true] %s108_s2 }
  0x15   :  { %86 = dma.hbm_to_vmem [thread:$0]  %s79_s18, 2048, %s81_s21, [#allocation9], %s2685_s26, %s2685_s26, %s2686_s28  }
  0x16   :  { %s123_s5 = sshll.u32 %s4072_s11, 4  ;;  %s2690_s25 = smov [#allocation13]   ;;  %s124_s5 = int_to_ptr.hbm [resolvable:$true] %s123_s5 }
  0x17   :  { %s110_s27 = sshll.u32 %s2690_s25, 4  ;;  %s2691_s29 = smov [#allocation14]   ;;  %s111_s27 = int_to_ptr.vmem [resolvable:$true] %s110_s27 }
  0x18   :  { %116 = dma.hbm_to_vmem [thread:$0]  %s109_s2, 1024, %s111_s27, [#allocation12], %s2685_s26, %s2685_s26, %s2686_s28  }
  0x19   :  { %s125_s9 = sshll.u32 %s2691_s29, 4  ;;  %s126_s9 = int_to_ptr.vmem [resolvable:$true] %s125_s9 }
  0x1a   :  { %131 = dma.hbm_to_vmem [thread:$0]  %s124_s5, 1024, %s126_s9, [#allocation15], %s2685_s26, %s2685_s26, %s2686_s28  }
  0x1b   :  { %2668 = dma.done.wait [#allocation3], 2048  }
  0x1c   :  { %2669 = vsyncadd [#allocation3], 4294965248 }
  0x1d   :  { %2670 = dma.done.wait [#allocation6], 2080  }
  0x1e   :  { %2671 = vsyncadd [#allocation6], 4294965216 }
  0x1f   :  { %2672 = dma.done.wait [#allocation9], 2080  }
  0x20   :  { %2673 = vsyncadd [#allocation9], 4294965216 }
  0x21   :  { %2674 = dma.done.wait [#allocation12], 2048  }
  0x22   :  { %2675 = vsyncadd [#allocation12], 4294965248 }
  0x23   :  { %2676 = dma.done.wait [#allocation15], 1024  }
  0x24   :  { %2677 = vsyncadd [#allocation15], 4294966272  ;;  %v2169_v0 = vld [vmem:[#allocation5 + $0x70] sm:$0xf]  ;;  %v2366_v1 = vld [vmem:[#allocation5 + $0x74] sm:$0xf0] }
  0x25   :  { %v2365_v2 = vld [vmem:[#allocation5 + $0x74] sm:$0xf]  ;;  %v2170_v3 = vor.u32 %v2366_v1, %v2169_v0  ;;  %v2171_v4 = vld [vmem:[#allocation5 + $0x78] sm:$0xf0]  ;;  %v2161_v5 = vld [vmem:[#allocation5 + $0x60] sm:$0xf] }
  0x26   :  { %v2364_v6 = vld [vmem:[#allocation5 + $0x64] sm:$0xf0]  ;;  %v2805_v7 = vor.u32 %v2365_v2, %v2171_v4  ;;  %v2363_v8 = vld [vmem:[#allocation5 + $0x64] sm:$0xf]  ;;  %v2163_v9 = vld [vmem:[#allocation5 + $0x68] sm:$0xf0] }
  0x27   :  { %396 = vmatpush.bf16.msra.mxu0 %v2170_v3  ;;  %v2162_v10 = vor.u32 %v2364_v6, %v2161_v5  ;;  %2407 = vmatpush.bf16.msra.mxu3 %v2170_v3  ;;  %v2166_v11 = vor.u32 %v2363_v8, %v2163_v9  ;;  %v2153_v12 = vld [vmem:[#allocation5 + $0x50] sm:$0xf]  ;;  %v2362_v13 = vld [vmem:[#allocation5 + $0x54] sm:$0xf0]  ;;  %v2361_v14 = vld [vmem:[#allocation5 + $0x54] sm:$0xf] }
  0x28   :  { %485 = vmatpush.bf16.msra.mxu1 %v2805_v7  ;;  %v2155_v15 = vld [vmem:[#allocation5 + $0x58] sm:$0xf0]  ;;  %v2154_v16 = vor.u32 %v2362_v13, %v2153_v12  ;;  %v2145_v18 = vld [vmem:[#allocation5 + $0x40] sm:$0xf]  ;;  %v2360_v19 = vld [vmem:[#allocation5 + $0x44] sm:$0xf0] }
  0x29   :  { %v2158_v17 = vor.u32 %v2361_v14, %v2155_v15  ;;  %v2359_v20 = vld [vmem:[#allocation5 + $0x44] sm:$0xf]  ;;  %v2147_v21 = vld [vmem:[#allocation5 + $0x48] sm:$0xf0]  ;;  %v2146_v22 = vor.u32 %v2360_v19, %v2145_v18  ;;  %v2137_v23 = vld [vmem:[#allocation5 + $0x30] sm:$0xf] }
  0x2a   :  { %v2150_v24 = vor.u32 %v2359_v20, %v2147_v21  ;;  %v2358_v25 = vld [vmem:[#allocation5 + $0x34] sm:$0xf0]  ;;  %v2357_v26 = vld [vmem:[#allocation5 + $0x34] sm:$0xf]  ;;  %v2139_v27 = vld [vmem:[#allocation5 + $0x38] sm:$0xf0] }
  0x2b   :  { %397 = vmatpush.bf16.msra.mxu0 %v2162_v10  ;;  %2408 = vmatpush.bf16.msra.mxu3 %v2162_v10  ;;  %v2138_v28 = vor.u32 %v2358_v25, %v2137_v23  ;;  %v2142_v29 = vor.u32 %v2357_v26, %v2139_v27  ;;  %v2129_v30 = vld [vmem:[#allocation5 + $0x20] sm:$0xf]  ;;  %v2356_v31 = vld [vmem:[#allocation5 + $0x24] sm:$0xf0]  ;;  %v2355_v32 = vld [vmem:[#allocation5 + $0x24] sm:$0xf] }
  0x2c   :  { %486 = vmatpush.bf16.msra.mxu1 %v2166_v11  ;;  %v2131_v33 = vld [vmem:[#allocation5 + $0x28] sm:$0xf0]  ;;  %v2130_v34 = vor.u32 %v2356_v31, %v2129_v30  ;;  %v2121_v36 = vld [vmem:[#allocation5 + $0x10] sm:$0xf]  ;;  %v2354_v37 = vld [vmem:[#allocation5 + $0x14] sm:$0xf0] }
  0x2d   :  { %v2134_v35 = vor.u32 %v2355_v32, %v2131_v33  ;;  %v2353_v38 = vld [vmem:[#allocation5 + $0x14] sm:$0xf]  ;;  %v2123_v39 = vld [vmem:[#allocation5 + $0x18] sm:$0xf0]  ;;  %v2122_v40 = vor.u32 %v2354_v37, %v2121_v36  ;;  %v2113_v42 = vld [vmem:[#allocation5] sm:$0xf] }
  0x2e   :  { %v2126_v41 = vor.u32 %v2353_v38, %v2123_v39  ;;  %v2352_v43 = vld [vmem:[#allocation5 + $0x4] sm:$0xf0]  ;;  %v2351_v44 = vld [vmem:[#allocation5 + $0x4] sm:$0xf]  ;;  %v2115_v45 = vld [vmem:[#allocation5 + $0x8] sm:$0xf0] }
  0x2f   :  { %398 = vmatpush.bf16.msra.mxu0 %v2154_v16  ;;  %2409 = vmatpush.bf16.msra.mxu3 %v2154_v16  ;;  %v2114_v46 = vor.u32 %v2352_v43, %v2113_v42  ;;  %v2118_v47 = vor.u32 %v2351_v44, %v2115_v45  ;;  %v2335_v48 = vld [vmem:[#allocation2] sm:$0xff]  ;;  %v2336_v49 = vld [vmem:[#allocation2 + $0x8] sm:$0xff]  ;;  %v2337_v50 = vld [vmem:[#allocation2 + $0x10] sm:$0xff]  ;;  %vm884_vm5 = vcmask 1040384   ;;  %s2030_s19 = sshll.u32 %s4074_s13, 4  ;;  %s2031_s19 = int_to_ptr.hbm [resolvable:$true] %s2030_s19 }
  0x30   :  { %487 = vmatpush.bf16.msra.mxu1 %v2158_v17  ;;  %v2347_v51 = vld [vmem:[#allocation2 + $0x60] sm:$0xff]  ;;  %v2338_v52 = vld [vmem:[#allocation2 + $0x18] sm:$0xff]  ;;  %v2348_v53 = vld [vmem:[#allocation2 + $0x68] sm:$0xff] }
  0x31   :  { %v2339_v54 = vld [vmem:[#allocation2 + $0x20] sm:$0xff]  ;;  %v2349_v55 = vld [vmem:[#allocation2 + $0x70] sm:$0xff]  ;;  %v2340_v56 = vld [vmem:[#allocation2 + $0x28] sm:$0xff] }
  0x32   :  { %v2350_v57 = vld [vmem:[#allocation2 + $0x78] sm:$0xff]  ;;  %v2341_v58 = vld [vmem:[#allocation2 + $0x30] sm:$0xff]  ;;  %v2343_v60 = vld [vmem:[#allocation2 + $0x40] sm:$0xff] }
  0x33   :  { %399 = vmatpush.bf16.msra.mxu0 %v2146_v22  ;;  %2410 = vmatpush.bf16.msra.mxu3 %v2146_v22  ;;  %v2342_v59 = vld [vmem:[#allocation2 + $0x38] sm:$0xff]  ;;  %v2344_v1 = vld [vmem:[#allocation2 + $0x48] sm:$0xff]  ;;  %v2345_v6 = vld [vmem:[#allocation2 + $0x50] sm:$0xff] }
  0x34   :  { %488 = vmatpush.bf16.msra.mxu1 %v2150_v24  ;;  %v2346_v12 = vld [vmem:[#allocation2 + $0x58] sm:$0xff]  ;;  %v214_v38 = vld [vmem:[#allocation7] sm:$0x3] }
  0x35   :  { %v2865_v39 = vperm.slane %v214_v38, 0 }
  0x37   :  { %400 = vmatpush.bf16.msra.mxu0 %v2138_v28  ;;  %2411 = vmatpush.bf16.msra.mxu3 %v2138_v28 }
  0x38   :  { %489 = vmatpush.bf16.msra.mxu1 %v2142_v29 }
  0x3b   :  { %401 = vmatpush.bf16.msra.mxu0 %v2130_v34  ;;  %2412 = vmatpush.bf16.msra.mxu3 %v2130_v34 }
  0x3c   :  { %490 = vmatpush.bf16.msra.mxu1 %v2134_v35 }
  0x3f   :  { %402 = vmatpush.bf16.msra.mxu0 %v2122_v40  ;;  %2413 = vmatpush.bf16.msra.mxu3 %v2122_v40  ;;  %v2867_v40 = vperm.slane %v214_v38, 1 }
  0x40   :  { %491 = vmatpush.bf16.msra.mxu1 %v2126_v41 }
  0x43   :  { %403 = vmatpush.bf16.msra.mxu0 %v2114_v46  ;;  %2414 = vmatpush.bf16.msra.mxu3 %v2114_v46 }
  0x44   :  { %492 = vmatpush.bf16.msra.mxu1 %v2118_v47 }
  0x46   :  { %404 = vmatmul.bf16.vlgmr.msra.gmra.mxu0 %v2335_v48  ;;  %464 = vmatmul.bf16.vlgmr.msra.gmra.mxu3 %v2347_v51 }
  0x47   :  { %2415 = vmatpush.bf16.msrb.mxu3 %v2805_v7  ;;  %493 = vmatmul.bf16.vlgmr.msra.gmra.mxu1 %v2335_v48 }
  0x4b   :  { %2416 = vmatpush.bf16.msrb.mxu3 %v2166_v11 }
  0x4f   :  { %2417 = vmatpush.bf16.msrb.mxu3 %v2158_v17 }
  0x53   :  { %2418 = vmatpush.bf16.msrb.mxu3 %v2150_v24 }
  0x56   :  { %409 = vmatmul.bf16.gmra.mxu0 %v2336_v49  ;;  %469 = vmatmul.bf16.gmra.mxu3 %v2348_v53 }
  0x57   :  { %2419 = vmatpush.bf16.msrb.mxu3 %v2142_v29  ;;  %498 = vmatmul.bf16.gmra.mxu1 %v2336_v49 }
  0x5b   :  { %2420 = vmatpush.bf16.msrb.mxu3 %v2134_v35 }
  0x5f   :  { %2421 = vmatpush.bf16.msrb.mxu3 %v2126_v41 }
  0x63   :  { %2422 = vmatpush.bf16.msrb.mxu3 %v2118_v47 }
  0x66   :  { %414 = vmatmul.bf16.gmra.mxu0 %v2337_v50  ;;  %474 = vmatmul.bf16.gmra.mxu3 %v2349_v55 }
  0x67   :  { %503 = vmatmul.bf16.gmra.mxu1 %v2337_v50 }
  0x76   :  { %419 = vmatmul.bf16.gmra.mxu0 %v2338_v52  ;;  %479 = vmatmul.bf16.gmra.mxu3 %v2350_v57 }
  0x77   :  { %508 = vmatmul.bf16.gmra.mxu1 %v2338_v52 }
  0x86   :  { %424 = vmatmul.bf16.gmra.mxu0 %v2339_v54  ;;  %553 = vmatmul.bf16.vlgmr.msrb.gmra.mxu3 %v2347_v51 }
  0x87   :  { %513 = vmatmul.bf16.gmra.mxu1 %v2339_v54 }
  0x96   :  { %429 = vmatmul.bf16.gmra.mxu0 %v2340_v56  ;;  %558 = vmatmul.bf16.gmra.mxu3 %v2348_v53 }
  0x97   :  { %518 = vmatmul.bf16.gmra.mxu1 %v2340_v56 }
  0xa6   :  { %434 = vmatmul.bf16.gmra.mxu0 %v2341_v58  ;;  %563 = vmatmul.bf16.gmra.mxu3 %v2349_v55 }
  0xa7   :  { %523 = vmatmul.bf16.gmra.mxu1 %v2341_v58 }
  0xb6   :  { %439 = vmatmul.bf16.gmra.mxu0 %v2342_v59  ;;  %568 = vmatmul.bf16.gmra.mxu3 %v2350_v57 }
  0xb7   :  { %528 = vmatmul.bf16.gmra.mxu1 %v2342_v59 }
  0xc3   :  { %v405_v61 = vpop.f32.mrf.mxu0 }
  0xc4   :  { %v494_v62 = vpop.f32.mrf.mxu1  ;;  %v406_v45 = vadd.f32 %v405_v61, %v2865_v39 }
  0xc5   :  { %v495_v46 = vadd.f32 %v494_v62, %v2867_v40 }
  0xc6   :  { %444 = vmatmul.bf16.gmra.mxu0 %v2343_v60  ;;  %v2887_v54 = vmax.f32 %v406_v45, 0.0 }
  0xc7   :  { %533 = vmatmul.bf16.gmra.mxu1 %v2343_v60  ;;  %v2889_v55 = vmax.f32 %v495_v46, 0.0 }
  0xc8   :  { %4103 = vst [vmem:[#allocation24_spill] sm:$0xff] %v2887_v54 }
  0xc9   :  { %v2813_v11 = vpop.f32.mrf.mxu3 }
  0xcb   :  { %v407_v63 = vpop.f32.mrf.mxu0 }
  0xcc   :  { %v496_v0 = vpop.f32.mrf.mxu1  ;;  %v408_v43 = vadd.f32 %v407_v63, %v2865_v39 }
  0xcd   :  { %v497_v44 = vadd.f32 %v496_v0, %v2867_v40 }
  0xce   :  { %v2881_v50 = vmax.f32 %v408_v43, 0.0 }
  0xcf   :  { %v2883_v51 = vmax.f32 %v497_v44, 0.0 }
  0xd0   :  { %4102 = vst [vmem:[#allocation23_spill] sm:$0xff] %v2881_v50  ;;  %v714_v60 = vmul.f32 %v2881_v50, %v2881_v50 }
  0xd1   :  { %v2819_v15 = vpop.f32.mrf.mxu3  ;;  %v715_v63 = vmul.f32 %v2883_v51, %v2883_v51  ;;  %v675_v38 = vadd.f32 %v2883_v51, %v2889_v55 }
  0xd3   :  { %v410_v2 = vpop.f32.mrf.mxu0 }
  0xd4   :  { %v499_v3 = vpop.f32.mrf.mxu1  ;;  %v411_v47 = vadd.f32 %v410_v2, %v2865_v39  ;;  %v712_v2 = vmul.f32 %v2887_v54, %v2887_v54 }
  0xd5   :  { %v500_v48 = vadd.f32 %v499_v3, %v2867_v40  ;;  %v713_v3 = vmul.f32 %v2889_v55, %v2889_v55 }
  0xd6   :  { %449 = vmatmul.bf16.gmra.mxu0 %v2344_v1  ;;  %v2891_v56 = vmax.f32 %v411_v47, 0.0 }
  0xd7   :  { %538 = vmatmul.bf16.gmra.mxu1 %v2344_v1  ;;  %v2895_v58 = vmax.f32 %v500_v48, 0.0  ;;  %v813_v45 = vadd.f32 %v715_v63, %v713_v3 }
  0xd8   :  { %4104 = vst [vmem:[#allocation25_spill] sm:$0xff] %v2891_v56 }
  0xd9   :  { %v2829_v20 = vpop.f32.mrf.mxu3 }
  0xdb   :  { %v412_v4 = vpop.f32.mrf.mxu0 }
  0xdc   :  { %v501_v5 = vpop.f32.mrf.mxu1  ;;  %v413_v52 = vadd.f32 %v412_v4, %v2865_v39  ;;  %v716_v4 = vmul.f32 %v2891_v56, %v2891_v56 }
  0xdd   :  { %v502_v53 = vadd.f32 %v501_v5, %v2867_v40  ;;  %v638_v5 = vadd.f32 %v2881_v50, %v2887_v54 }
  0xde   :  { %v2905_v0 = vmax.f32 %v413_v52, 0.0  ;;  %v676_v52 = vadd.f32 %v675_v38, %v2895_v58 }
  0xdf   :  { %v2907_v1 = vmax.f32 %v502_v53, 0.0 }
  0xe0   :  { %4105 = vst [vmem:[#allocation26_spill] sm:$0xff] %v2905_v0  ;;  %v718_v46 = vmul.f32 %v2905_v0, %v2905_v0 }
  0xe1   :  { %v2835_v23 = vpop.f32.mrf.mxu3  ;;  %v719_v47 = vmul.f32 %v2907_v1, %v2907_v1 }
  0xe3   :  { %v415_v7 = vpop.f32.mrf.mxu0 }
  0xe4   :  { %v504_v8 = vpop.f32.mrf.mxu1  ;;  %v416_v61 = vadd.f32 %v415_v7, %v2865_v39 }
  0xe5   :  { %v505_v62 = vadd.f32 %v504_v8, %v2867_v40 }
  0xe6   :  { %454 = vmatmul.bf16.gmra.mxu0 %v2345_v6  ;;  %v2925_v43 = vmax.f32 %v416_v61, 0.0 }
  0xe7   :  { %543 = vmatmul.bf16.gmra.mxu1 %v2345_v6  ;;  %v717_v6 = vmul.f32 %v2895_v58, %v2895_v58  ;;  %v2927_v44 = vmax.f32 %v505_v62, 0.0 }
  0xe8   :  { %4106 = vst [vmem:[#allocation27_spill] sm:$0xff] %v2925_v43 }
  0xe9   :  { %v2841_v26 = vpop.f32.mrf.mxu3  ;;  %v814_v61 = vadd.f32 %v813_v45, %v717_v6  ;;  %v466_v6 = vadd.f32 %v2813_v11, %v2865_v39 }
  0xeb   :  { %v2809_v9 = vpop.f32.mrf.mxu0 }
  0xec   :  { %v2811_v10 = vpop.f32.mrf.mxu1  ;;  %v418_v7 = vadd.f32 %v2809_v9, %v2865_v39  ;;  %v639_v9 = vadd.f32 %v638_v5, %v2891_v56 }
  0xed   :  { %v507_v8 = vadd.f32 %v2811_v10, %v2867_v40 }
  0xee   :  { %v2941_v62 = vmax.f32 %v418_v7, 0.0  ;;  %v640_v5 = vadd.f32 %v639_v9, %v2905_v0  ;;  %v468_v0 = vadd.f32 %v2819_v15, %v2865_v39 }
  0xef   :  { %v2943_v63 = vmax.f32 %v507_v8, 0.0  ;;  %v677_v8 = vadd.f32 %v676_v52, %v2907_v1 }
  0xf0   :  { %4107 = vst [vmem:[#allocation28_spill] sm:$0xff] %v2941_v62  ;;  %v641_v38 = vadd.f32 %v640_v5, %v2925_v43  ;;  %v722_v11 = vmul.f32 %v2941_v62, %v2941_v62 }
  0xf1   :  { %v2847_v29 = vpop.f32.mrf.mxu3  ;;  %v678_v56 = vadd.f32 %v677_v8, %v2927_v44 }
  0xf3   :  { %v2815_v13 = vpop.f32.mrf.mxu0  ;;  %v679_v15 = vadd.f32 %v678_v56, %v2943_v63 }
  0xf4   :  { %v2817_v14 = vpop.f32.mrf.mxu1  ;;  %v421_v53 = vadd.f32 %v2815_v13, %v2865_v39  ;;  %v721_v13 = vmul.f32 %v2927_v44, %v2927_v44 }
  0xf6   :  { %459 = vmatmul.bf16.gmra.mxu0 %v2346_v12  ;;  %v2960_v45 = vmax.f32 %v421_v53, 0.0  ;;  %v2975_v53 = vmax.f32 %v466_v6, 0.0 }
  0xf7   :  { %548 = vmatmul.bf16.gmra.mxu1 %v2346_v12  ;;  %v776_v12 = vadd.f32 %v714_v60, %v712_v2  ;;  %v510_v2 = vadd.f32 %v2817_v14, %v2867_v40 }
  0xf8   :  { %4108 = vst [vmem:[#allocation29_spill] sm:$0xff] %v2960_v45 }
  0xf9   :  { %v2857_v34 = vpop.f32.mrf.mxu3  ;;  %v777_v10 = vadd.f32 %v776_v12, %v716_v4  ;;  %v720_v4 = vmul.f32 %v2925_v43, %v2925_v43  ;;  %v815_v12 = vadd.f32 %v814_v61, %v719_v47  ;;  %v2971_v47 = vmax.f32 %v510_v2, 0.0 }
  0xfa   :  { %v724_v2 = vmul.f32 %v2960_v45, %v2960_v45 }
  0xfb   :  { %v2821_v16 = vpop.f32.mrf.mxu0  ;;  %v778_v7 = vadd.f32 %v777_v10, %v718_v46  ;;  %v723_v46 = vmul.f32 %v2943_v63, %v2943_v63  ;;  %v816_v10 = vadd.f32 %v815_v12, %v721_v13  ;;  %v725_v56 = vmul.f32 %v2971_v47, %v2971_v47 }
  0xfc   :  { %v2823_v17 = vpop.f32.mrf.mxu1  ;;  %v423_v14 = vadd.f32 %v2821_v16, %v2865_v39 }
  0xfd   :  { %v512_v9 = vadd.f32 %v2823_v17, %v2867_v40  ;;  %v779_v16 = vadd.f32 %v778_v7, %v720_v4  ;;  %v642_v17 = vadd.f32 %v641_v38, %v2941_v62  ;;  %v2987_v4 = vmax.f32 %v468_v0, 0.0 }
  0xfe   :  { %v2979_v61 = vmax.f32 %v423_v14, 0.0  ;;  %v817_v7 = vadd.f32 %v816_v10, %v723_v46 }
  0xff   :  { %v2985_v8 = vmax.f32 %v512_v9, 0.0  ;;  %v780_v6 = vadd.f32 %v779_v16, %v722_v11  ;;  %v643_v0 = vadd.f32 %v642_v17, %v2960_v45  ;;  %v473_v9 = vadd.f32 %v2835_v23, %v2865_v39 }
 0x100   :  { %4109 = vst [vmem:[#allocation30_spill] sm:$0xff] %v2979_v61  ;;  %v680_v11 = vadd.f32 %v679_v15, %v2971_v47  ;;  %v3021_v17 = vmul.f32 %v2987_v4, %v2987_v4  ;;  %v818_v23 = vadd.f32 %v817_v7, %v725_v56 }
 0x101   :  { %v2863_v37 = vpop.f32.mrf.mxu3  ;;  %v781_v10 = vadd.f32 %v780_v6, %v724_v2  ;;  %v3035_v43 = vmax.f32 %v473_v9, 0.0 }
 0x102   :  { %v681_v2 = vadd.f32 %v680_v11, %v2985_v8 }
 0x103   :  { %v2825_v18 = vpop.f32.mrf.mxu0 }
 0x104   :  { %v2827_v19 = vpop.f32.mrf.mxu1  ;;  %v426_v52 = vadd.f32 %v2825_v18, %v2865_v39  ;;  %v471_v18 = vadd.f32 %v2829_v20, %v2865_v39  ;;  %v3006_v20 = vmul.f32 %v2975_v53, %v2975_v53 }
 0x105   :  { %v515_v5 = vadd.f32 %v2827_v19, %v2867_v40 }
 0x106   :  { %v3002_v38 = vmax.f32 %v426_v52, 0.0  ;;  %v727_v52 = vmul.f32 %v2985_v8, %v2985_v8  ;;  %v3023_v45 = vmax.f32 %v471_v18, 0.0 }
 0x107   :  { %v3013_v46 = vmax.f32 %v515_v5, 0.0 }
 0x108   :  { %4110 = vst [vmem:[#allocation31_spill] sm:$0xff] %v3002_v38  ;;  %v728_v6 = vmul.f32 %v3002_v38, %v3002_v38 }
 0x109   :  { %v2879_v49 = vpop.f32.mrf.mxu3  ;;  %v729_v7 = vmul.f32 %v3013_v46, %v3013_v46 }
 0x10b   :  { %v2831_v21 = vpop.f32.mrf.mxu0 }
 0x10c   :  { %v2833_v22 = vpop.f32.mrf.mxu1  ;;  %v428_v19 = vadd.f32 %v2831_v21, %v2865_v39  ;;  %v726_v21 = vmul.f32 %v2979_v61, %v2979_v61 }
 0x10d   :  { %v517_v16 = vadd.f32 %v2833_v22, %v2867_v40  ;;  %v644_v22 = vadd.f32 %v643_v0, %v2979_v61  ;;  %v3046_v0 = vmul.f32 %v3023_v45, %v3023_v45 }
 0x10e   :  { %v3025_v15 = vmax.f32 %v428_v19, 0.0  ;;  %v782_v18 = vadd.f32 %v781_v10, %v726_v21  ;;  %v819_v19 = vadd.f32 %v818_v23, %v727_v52  ;;  %v682_v21 = vadd.f32 %v681_v2, %v3013_v46 }
 0x10f   :  { %v3039_v56 = vmax.f32 %v517_v16, 0.0 }
 0x110   :  { %4111 = vst [vmem:[#allocation32_spill] sm:$0xff] %v3025_v15  ;;  %v730_v16 = vmul.f32 %v3025_v15, %v3025_v15  ;;  %v783_v23 = vadd.f32 %v782_v18, %v728_v6  ;;  %v820_v61 = vadd.f32 %v819_v19, %v729_v7 }
 0x111   :  { %v2933_v48 = vpop.f32.mrf.mxu3  ;;  %4112 = vst [vmem:[#allocation33_spill] sm:$0xff] %v3039_v56  ;;  %v683_v6 = vadd.f32 %v682_v21, %v3039_v56 }
 0x112   :  { %v784_v7 = vadd.f32 %v783_v23, %v730_v16 }
 0x113   :  { %v2837_v24 = vpop.f32.mrf.mxu0 }
 0x114   :  { %v2839_v25 = vpop.f32.mrf.mxu1  ;;  %v431_v5 = vadd.f32 %v2837_v24, %v2865_v39 }
 0x115   :  { %v520_v62 = vadd.f32 %v2839_v25, %v2867_v40  ;;  %v645_v25 = vadd.f32 %v644_v22, %v3002_v38 }
 0x116   :  { %v3055_v10 = vmax.f32 %v431_v5, 0.0 }
 0x117   :  { %v646_v38 = vadd.f32 %v645_v25, %v3025_v15  ;;  %v3089_v25 = vadd.f32 %v2841_v26, %v2865_v39  ;;  %v3104_v26 = vadd.f32 %v2847_v29, %v2865_v39 }
 0x118   :  { %4113 = vst [vmem:[#allocation34_spill] sm:$0xff] %v3055_v10  ;;  %v732_v19 = vmul.f32 %v3055_v10, %v3055_v10 }
 0x119   :  { %v2999_v14 = vpop.f32.mrf.mxu3  ;;  %v647_v23 = vadd.f32 %v646_v38, %v3055_v10 }
 0x11b   :  { %v2843_v27 = vpop.f32.mrf.mxu0 }
 0x11c   :  { %v2845_v28 = vpop.f32.mrf.mxu1  ;;  %v433_v24 = vadd.f32 %v2843_v27, %v2865_v39  ;;  %v3057_v27 = vmax.f32 %v520_v62, 0.0  ;;  %v731_v62 = vmul.f32 %v3039_v56, %v3039_v56 }
 0x11d   :  { %v522_v9 = vadd.f32 %v2845_v28, %v2867_v40  ;;  %v3065_v28 = vmul.f32 %v3035_v43, %v3035_v43 }
 0x11e   :  { %4114 = vst [vmem:[#allocation35_spill] sm:$0xff] %v3057_v27  ;;  %v3072_v5 = vmax.f32 %v433_v24, 0.0  ;;  %v733_v24 = vmul.f32 %v3057_v27, %v3057_v27  ;;  %v821_v16 = vadd.f32 %v820_v61, %v731_v62  ;;  %v785_v61 = vadd.f32 %v784_v7, %v732_v19 }
 0x120   :  { %4115 = vst [vmem:[#allocation36_spill] sm:$0xff] %v3072_v5  ;;  %v734_v15 = vmul.f32 %v3072_v5, %v3072_v5  ;;  %v822_v62 = vadd.f32 %v821_v16, %v733_v24  ;;  %v648_v7 = vadd.f32 %v647_v23, %v3072_v5 }
 0x121   :  { %v3074_v50 = vpop.f32.mrf.mxu3 }
 0x122   :  { %v786_v19 = vadd.f32 %v785_v61, %v734_v15 }
 0x123   :  { %v2849_v30 = vpop.f32.mrf.mxu0 }
 0x124   :  { %v2851_v31 = vpop.f32.mrf.mxu1  ;;  %v436_v22 = vadd.f32 %v2849_v30, %v2865_v39  ;;  %v3077_v30 = vmax.f32 %v522_v9, 0.0 }
 0x125   :  { %v525_v2 = vadd.f32 %v2851_v31, %v2867_v40 }
 0x126   :  { %v3091_v21 = vmax.f32 %v436_v22, 0.0  ;;  %v684_v22 = vadd.f32 %v683_v6, %v3057_v27 }
 0x127   :  { %v3093_v9 = vmax.f32 %v525_v2, 0.0  ;;  %v735_v2 = vmul.f32 %v3077_v30, %v3077_v30 }
 0x128   :  { %4116 = vst [vmem:[#allocation37_spill] sm:$0xff] %v3091_v21  ;;  %v736_v6 = vmul.f32 %v3091_v21, %v3091_v21  ;;  %v685_v24 = vadd.f32 %v684_v22, %v3077_v30 }
 0x129   :  { %4117 = vst [vmem:[#allocation38_spill] sm:$0xff] %v3093_v9  ;;  %v737_v27 = vmul.f32 %v3093_v9, %v3093_v9  ;;  %v3141_v61 = vpop.f32.mrf.mxu3 }
 0x12a   :  { %v686_v23 = vadd.f32 %v685_v24, %v3093_v9 }
 0x12b   :  { %v2853_v32 = vpop.f32.mrf.mxu0 }
 0x12c   :  { %v2855_v33 = vpop.f32.mrf.mxu1  ;;  %v438_v18 = vadd.f32 %v2853_v32, %v2865_v39 }
 0x12d   :  { %v527_v31 = vadd.f32 %v2855_v33, %v2867_v40 }
 0x12e   :  { %v3109_v54 = vmax.f32 %v438_v18, 0.0 }
 0x130   :  { %4118 = vst [vmem:[#allocation39_spill] sm:$0xff] %v3109_v54  ;;  %v738_v16 = vmul.f32 %v3109_v54, %v3109_v54 }
 0x133   :  { %v2859_v35 = vpop.f32.mrf.mxu0 }
 0x134   :  { %v2861_v36 = vpop.f32.mrf.mxu1  ;;  %v441_v32 = vadd.f32 %v2859_v35, %v2865_v39  ;;  %v3111_v35 = vmax.f32 %v527_v31, 0.0 }
 0x135   :  { %v530_v33 = vadd.f32 %v2861_v36, %v2867_v40 }
 0x136   :  { %v3121_v18 = vmax.f32 %v441_v32, 0.0  ;;  %v739_v56 = vmul.f32 %v3111_v35, %v3111_v35 }
 0x137   :  { %v3123_v31 = vmax.f32 %v530_v33, 0.0  ;;  %v649_v33 = vadd.f32 %v648_v7, %v3091_v21  ;;  %v687_v7 = vadd.f32 %v686_v23, %v3111_v35 }
 0x138   :  { %4119 = vst [vmem:[#allocation40_spill] sm:$0xff] %v3121_v18 }
 0x139   :  { %v741_v5 = vmul.f32 %v3123_v31, %v3123_v31 }
 0x13b   :  { %v2869_v41 = vpop.f32.mrf.mxu0 }
 0x13c   :  { %v2871_v42 = vpop.f32.mrf.mxu1  ;;  %v443_v38 = vadd.f32 %v2869_v41, %v2865_v39 }
 0x13d   :  { %v532_v10 = vadd.f32 %v2871_v42, %v2867_v40  ;;  %v823_v42 = vadd.f32 %v822_v62, %v735_v2  ;;  %v740_v62 = vmul.f32 %v3121_v18, %v3121_v18 }
 0x13e   :  { %v3137_v15 = vmax.f32 %v443_v38, 0.0 }
 0x13f   :  { %v3139_v22 = vmax.f32 %v532_v10, 0.0  ;;  %v824_v2 = vadd.f32 %v823_v42, %v737_v27 }
 0x140   :  { %4120 = vst [vmem:[#allocation41_spill] sm:$0xff] %v3137_v15  ;;  %v742_v42 = vmul.f32 %v3137_v15, %v3137_v15 }
 0x141   :  { %v825_v24 = vadd.f32 %v824_v2, %v739_v56  ;;  %v688_v56 = vadd.f32 %v687_v7, %v3123_v31 }
 0x143   :  { %v2893_v57 = vpop.f32.mrf.mxu0 }
 0x144   :  { %v2897_v59 = vpop.f32.mrf.mxu1  ;;  %v446_v41 = vadd.f32 %v2893_v57, %v2865_v39  ;;  %v787_v57 = vadd.f32 %v786_v19, %v736_v6 }
 0x145   :  { %v535_v32 = vadd.f32 %v2897_v59, %v2867_v40  ;;  %v650_v59 = vadd.f32 %v649_v33, %v3109_v54 }
 0x146   :  { %v3149_v21 = vmax.f32 %v446_v41, 0.0  ;;  %v788_v38 = vadd.f32 %v787_v57, %v738_v16  ;;  %v743_v41 = vmul.f32 %v3139_v22, %v3139_v22 }
 0x147   :  { %v3153_v9 = vmax.f32 %v535_v32, 0.0  ;;  %v651_v19 = vadd.f32 %v650_v59, %v3121_v18  ;;  %v826_v32 = vadd.f32 %v825_v24, %v741_v5 }
 0x148   :  { %4121 = vst [vmem:[#allocation42_spill] sm:$0xff] %v3149_v21  ;;  %v789_v16 = vadd.f32 %v788_v38, %v740_v62  ;;  %v744_v57 = vmul.f32 %v3149_v21, %v3149_v21 }
 0x149   :  { %v652_v23 = vadd.f32 %v651_v19, %v3137_v15  ;;  %v745_v62 = vmul.f32 %v3153_v9, %v3153_v9  ;;  %v827_v38 = vadd.f32 %v826_v32, %v743_v41 }
 0x14a   :  { %v790_v5 = vadd.f32 %v789_v16, %v742_v42  ;;  %v3194_v42 = vpop.f32.mrf.mxu3 }
 0x14b   :  { %v2939_v60 = vpop.f32.mrf.mxu0  ;;  %v653_v19 = vadd.f32 %v652_v23, %v3149_v21  ;;  %v828_v41 = vadd.f32 %v827_v38, %v745_v62 }
 0x14c   :  { %v2947_v3 = vpop.f32.mrf.mxu1  ;;  %v448_v10 = vadd.f32 %v2939_v60, %v2865_v39  ;;  %v791_v18 = vadd.f32 %v790_v5, %v744_v57 }
 0x14d   :  { %v537_v27 = vadd.f32 %v2947_v3, %v2867_v40 }
 0x14e   :  { %v3170_v2 = vmax.f32 %v448_v10, 0.0 }
 0x14f   :  { %v3177_v7 = vmax.f32 %v537_v27, 0.0 }
 0x150   :  { %4122 = vst [vmem:[#allocation43_spill] sm:$0xff] %v3170_v2  ;;  %v746_v27 = vmul.f32 %v3170_v2, %v3170_v2 }
 0x153   :  { %v2991_v13 = vpop.f32.mrf.mxu0 }
 0x154   :  { %v2997_v12 = vpop.f32.mrf.mxu1  ;;  %v451_v33 = vadd.f32 %v2991_v13, %v2865_v39  ;;  %v689_v13 = vadd.f32 %v688_v56, %v3139_v22 }
 0x155   :  { %v540_v3 = vadd.f32 %v2997_v12, %v2867_v40 }
 0x156   :  { %v3181_v24 = vmax.f32 %v451_v33, 0.0 }
 0x157   :  { %v3186_v15 = vmax.f32 %v540_v3, 0.0 }
 0x158   :  { %v748_v3 = vmul.f32 %v3181_v24, %v3181_v24 }
 0x15b   :  { %v3050_v11 = vpop.f32.mrf.mxu0 }
 0x15c   :  { %v3059_v52 = vpop.f32.mrf.mxu1  ;;  %v453_v59 = vadd.f32 %v3050_v11, %v2865_v39  ;;  %v690_v11 = vadd.f32 %v689_v13, %v3153_v9  ;;  %v749_v13 = vmul.f32 %v3186_v15, %v3186_v15 }
 0x15d   :  { %v542_v12 = vadd.f32 %v3059_v52, %v2867_v40 }
 0x15e   :  { %v3191_v54 = vmax.f32 %v453_v59, 0.0  ;;  %v691_v59 = vadd.f32 %v690_v11, %v3177_v7 }
 0x15f   :  { %v3198_v33 = vmax.f32 %v542_v12, 0.0  ;;  %v792_v12 = vadd.f32 %v791_v18, %v746_v27 }
 0x160   :  { %4123 = vst [vmem:[#allocation44_spill] sm:$0xff] %v3191_v54  ;;  %v750_v38 = vmul.f32 %v3191_v54, %v3191_v54 }
 0x161   :  { %v751_v11 = vmul.f32 %v3198_v33, %v3198_v33 }
 0x163   :  { %v455_v36 = vpop.f32.mrf.mxu0 }
 0x164   :  { %v544_v29 = vpop.f32.mrf.mxu1  ;;  %v456_v10 = vadd.f32 %v455_v36, %v2865_v39  ;;  %v747_v36 = vmul.f32 %v3177_v7, %v3177_v7 }
 0x165   :  { %v545_v56 = vadd.f32 %v544_v29, %v2867_v40  ;;  %v654_v29 = vadd.f32 %v653_v19, %v3170_v2 }
 0x166   :  { %v3204_v23 = vmax.f32 %v456_v10, 0.0  ;;  %v829_v19 = vadd.f32 %v828_v41, %v747_v36 }
 0x167   :  { %v3210_v62 = vmax.f32 %v545_v56, 0.0  ;;  %v655_v5 = vadd.f32 %v654_v29, %v3181_v24  ;;  %v793_v56 = vadd.f32 %v792_v12, %v748_v3 }
 0x168   :  { %4124 = vst [vmem:[#allocation45_spill] sm:$0xff] %v3204_v23  ;;  %v752_v18 = vmul.f32 %v3204_v23, %v3204_v23  ;;  %v830_v29 = vadd.f32 %v829_v19, %v749_v13 }
 0x169   :  { %v656_v21 = vadd.f32 %v655_v5, %v3191_v54  ;;  %v753_v41 = vmul.f32 %v3210_v62, %v3210_v62 }
 0x16a   :  { %v831_v13 = vadd.f32 %v830_v29, %v751_v11 }
 0x16b   :  { %v457_v6 = vpop.f32.mrf.mxu0  ;;  %v657_v3 = vadd.f32 %v656_v21, %v3204_v23 }
 0x16c   :  { %v546_v60 = vpop.f32.mrf.mxu1  ;;  %v458_v52 = vadd.f32 %v457_v6, %v2865_v39  ;;  %v832_v23 = vadd.f32 %v831_v13, %v753_v41 }
 0x16d   :  { %v547_v16 = vadd.f32 %v546_v60, %v2867_v40 }
 0x16e   :  { %v3216_v10 = vmax.f32 %v458_v52, 0.0 }
 0x16f   :  { %v3221_v2 = vmax.f32 %v547_v16, 0.0  ;;  %v555_v16 = vadd.f32 %v2879_v49, %v2867_v40 }
 0x170   :  { %4125 = vst [vmem:[#allocation46_spill] sm:$0xff] %v3216_v10 }
 0x171   :  { %v755_v5 = vmul.f32 %v3221_v2, %v3221_v2 }
 0x173   :  { %v460_v32 = vpop.f32.mrf.mxu0 }
 0x174   :  { %v461_v6 = vadd.f32 %v460_v32, %v2865_v39  ;;  %v549_v57 = vpop.f32.mrf.mxu1  ;;  %v692_v32 = vadd.f32 %v691_v59, %v3186_v15  ;;  %v754_v59 = vmul.f32 %v3216_v10, %v3216_v10 }
 0x175   :  { %v550_v60 = vadd.f32 %v549_v57, %v2867_v40  ;;  %v794_v57 = vadd.f32 %v793_v56, %v750_v38  ;;  %v569_v56 = vpop.f32.mrf.mxu3 }
 0x176   :  { %v3226_v27 = vmax.f32 %v461_v6, 0.0  ;;  %v693_v52 = vadd.f32 %v692_v32, %v3198_v33  ;;  %v557_v6 = vadd.f32 %v2933_v48, %v2867_v40  ;;  %v658_v32 = vadd.f32 %v657_v3, %v3216_v10 }
 0x177   :  { %v3231_v36 = vmax.f32 %v550_v60, 0.0  ;;  %v795_v19 = vadd.f32 %v794_v57, %v752_v18  ;;  %v560_v18 = vadd.f32 %v2999_v14, %v2867_v40  ;;  %v3256_v10 = vmax.f32 %v555_v16, 0.0 }
 0x178   :  { %v694_v12 = vadd.f32 %v693_v52, %v3210_v62  ;;  %v756_v49 = vmul.f32 %v3226_v27, %v3226_v27  ;;  %v659_v57 = vadd.f32 %v658_v32, %v3226_v27 }
 0x179   :  { %v757_v11 = vmul.f32 %v3231_v36, %v3231_v36  ;;  %v796_v52 = vadd.f32 %v795_v19, %v754_v59  ;;  %v3266_v59 = vmax.f32 %v557_v6, 0.0  ;;  %v3274_v32 = vmax.f32 %v560_v18, 0.0 }
 0x17a   :  { %v695_v48 = vadd.f32 %v694_v12, %v3221_v2  ;;  %v562_v12 = vadd.f32 %v3074_v50, %v2867_v40  ;;  %v565_v6 = vadd.f32 %v3141_v61, %v2867_v40 }
 0x17b   :  { %v462_v60 = vpop.f32.mrf.mxu0  ;;  %v797_v54 = vadd.f32 %v796_v52, %v756_v49 }
 0x17c   :  { %v463_v21 = vadd.f32 %v462_v60, %v2865_v39  ;;  %v551_v38 = vpop.f32.mrf.mxu1  ;;  %v833_v60 = vadd.f32 %v832_v23, %v755_v5  ;;  %v696_v41 = vadd.f32 %v695_v48, %v3231_v36  ;;  %v3272_v5 = vmax.f32 %v3089_v25, 0.0 }
 0x17d   :  { %v552_v29 = vadd.f32 %v551_v38, %v2867_v40  ;;  %v3285_v52 = vmax.f32 %v562_v12, 0.0 }
 0x17e   :  { %v3254_v3 = vmax.f32 %v463_v21, 0.0  ;;  %v834_v19 = vadd.f32 %v833_v60, %v757_v11  ;;  %v761_v21 = vmul.f32 %v3256_v10, %v3256_v10 }
 0x17f   :  { %v3259_v13 = vmax.f32 %v552_v29, 0.0  ;;  %v3283_v29 = vmax.f32 %v3104_v26, 0.0  ;;  %v765_v26 = vmul.f32 %v3274_v32, %v3274_v32 }
 0x180   :  { %v660_v38 = vadd.f32 %v659_v57, %v3254_v3  ;;  %v758_v14 = vmul.f32 %v3254_v3, %v3254_v3  ;;  %v567_v57 = vadd.f32 %v3194_v42, %v2867_v40  ;;  %v570_v42 = vadd.f32 %v569_v56, %v2867_v40 }
 0x181   :  { %v697_v16 = vadd.f32 %v696_v41, %v3259_v13  ;;  %v759_v23 = vmul.f32 %v3259_v13, %v3259_v13  ;;  %v481_v41 = vadd.f32 %v2857_v34, %v2865_v39  ;;  %v767_v34 = vmul.f32 %v3285_v52, %v3285_v52 }
 0x182   :  { %v661_v50 = vadd.f32 %v660_v38, %v2975_v53  ;;  %v798_v49 = vadd.f32 %v797_v54, %v758_v14  ;;  %v763_v54 = vmul.f32 %v3266_v59, %v3266_v59  ;;  %v3300_v14 = vmax.f32 %v565_v6, 0.0 }
 0x183   :  { %v698_v48 = vadd.f32 %v697_v16, %v3256_v10  ;;  %v835_v11 = vadd.f32 %v834_v19, %v759_v23  ;;  %v483_v23 = vadd.f32 %v2863_v37, %v2865_v39  ;;  %v768_v56 = vmul.f32 %v3272_v5, %v3272_v5 }
 0x184   :  { %v662_v25 = vadd.f32 %v661_v50, %v2987_v4  ;;  %v799_v18 = vadd.f32 %v798_v49, %v3006_v20  ;;  %v571_v20 = vpop.f32.mrf.mxu3 }
 0x185   :  { %v699_v61 = vadd.f32 %v698_v48, %v3266_v59  ;;  %v836_v60 = vadd.f32 %v835_v11, %v761_v21  ;;  %v3310_v21 = vmax.f32 %v567_v57, 0.0  ;;  %v572_v48 = vadd.f32 %v571_v20, %v2867_v40 }
 0x186   :  { %v663_v12 = vadd.f32 %v662_v25, %v3023_v45  ;;  %v800_v38 = vadd.f32 %v799_v18, %v3021_v17  ;;  %v3316_v11 = vmax.f32 %v481_v41, 0.0  ;;  %v769_v25 = vmul.f32 %v3300_v14, %v3300_v14 }
 0x187   :  { %v700_v19 = vadd.f32 %v699_v61, %v3274_v32  ;;  %v837_v16 = vadd.f32 %v836_v60, %v763_v54  ;;  %v770_v40 = vmul.f32 %v3283_v29, %v3283_v29  ;;  %v3327_v57 = vmax.f32 %v483_v23, 0.0 }
 0x188   :  { %v664_v50 = vadd.f32 %v663_v12, %v3035_v43  ;;  %v801_v49 = vadd.f32 %v800_v38, %v3046_v0  ;;  %v3322_v0 = vmax.f32 %v570_v42, 0.0  ;;  %v771_v41 = vmul.f32 %v3310_v21, %v3310_v21 }
 0x189   :  { %v838_v17 = vadd.f32 %v837_v16, %v765_v26  ;;  %v701_v6 = vadd.f32 %v700_v19, %v3285_v52  ;;  %4126 = vst [vmem:[#allocation47_spill] sm:$0xff] %v3327_v57  ;;  %v3333_v12 = vmax.f32 %v572_v48, 0.0  ;;  %v772_v38 = vmul.f32 %v3316_v11, %v3316_v11 }
 0x18a   :  { %v665_v37 = vadd.f32 %v664_v50, %v3272_v5  ;;  %v802_v39 = vadd.f32 %v801_v49, %v3065_v28  ;;  %v773_v42 = vmul.f32 %v3322_v0, %v3322_v0 }
 0x18b   :  { %v702_v18 = vadd.f32 %v701_v6, %v3300_v14  ;;  %v839_v54 = vadd.f32 %v838_v17, %v767_v34  ;;  %v774_v34 = vmul.f32 %v3327_v57, %v3327_v57  ;;  %v775_v48 = vmul.f32 %v3333_v12, %v3333_v12 }
 0x18c   :  { %v666_v61 = vadd.f32 %v665_v37, %v3283_v29  ;;  %v803_v60 = vadd.f32 %v802_v39, %v768_v56 }
 0x18d   :  { %v703_v28 = vadd.f32 %v702_v18, %v3310_v21  ;;  %v840_v26 = vadd.f32 %v839_v54, %v769_v25 }
 0x18e   :  { %v667_v20 = vadd.f32 %v666_v61, %v3316_v11  ;;  %v804_v19 = vadd.f32 %v803_v60, %v770_v40 }
 0x18f   :  { %v704_v16 = vadd.f32 %v703_v28, %v3322_v0  ;;  %v841_v23 = vadd.f32 %v840_v26, %v771_v41  ;;  %v2374_v28 = vld [vmem:[#allocation10 + $0x38] sm:$0xff] }
 0x190   :  { %v668_v50 = vadd.f32 %v667_v20, %v3327_v57  ;;  %v805_v49 = vadd.f32 %v804_v19, %v772_v38  ;;  %2423 = vmatpush.bf16.msra.mxu3 %v2374_v28  ;;  %1199 = vmatpush.bf16.msra.mxu2 %v2374_v28 }
 0x191   :  { %v842_v17 = vadd.f32 %v841_v23, %v773_v42  ;;  %v705_v6 = vadd.f32 %v704_v16, %v3333_v12 }
 0x192   :  { %v669_v56 = vrot.slane %v668_v50, 4  ;;  %v806_v37 = vadd.f32 %v805_v49, %v774_v34  ;;  %v2373_v34 = vld [vmem:[#allocation10 + $0x30] sm:$0xff] }
 0x193   :  { %v706_v39 = vrot.slane %v705_v6, 4  ;;  %v843_v25 = vadd.f32 %v842_v17, %v775_v48 }
 0x194   :  { %v670_v18 = vadd.f32 %v669_v56, %v668_v50  ;;  %v807_v54 = vrot.slane %v806_v37, 4  ;;  %2424 = vmatpush.bf16.msra.mxu3 %v2373_v34  ;;  %1200 = vmatpush.bf16.msra.mxu2 %v2373_v34 }
 0x195   :  { %v707_v40 = vadd.f32 %v706_v39, %v705_v6  ;;  %v844_v61 = vrot.slane %v843_v25, 4 }
 0x196   :  { %v671_v60 = vrot.slane %v670_v18, 2  ;;  %v808_v41 = vadd.f32 %v807_v54, %v806_v37 }
 0x197   :  { %v708_v26 = vrot.slane %v707_v40, 2  ;;  %v845_v20 = vadd.f32 %v844_v61, %v843_v25  ;;  %v2372_v25 = vld [vmem:[#allocation10 + $0x28] sm:$0xff] }
 0x198   :  { %v672_v38 = vadd.f32 %v671_v60, %v670_v18  ;;  %v809_v19 = vrot.slane %v808_v41, 2  ;;  %2425 = vmatpush.bf16.msra.mxu3 %v2372_v25  ;;  %1201 = vmatpush.bf16.msra.mxu2 %v2372_v25 }
 0x199   :  { %v709_v16 = vadd.f32 %v708_v26, %v707_v40  ;;  %v846_v42 = vrot.slane %v845_v20, 2  ;;  %v2371_v26 = vld [vmem:[#allocation10 + $0x20] sm:$0xff] }
 0x19a   :  { %v673_v23 = vrot.slane %v672_v38, 1  ;;  %v810_v57 = vadd.f32 %v809_v19, %v808_v41  ;;  %v2370_v19 = vld [vmem:[#allocation10 + $0x18] sm:$0xff] }
 0x19b   :  { %v710_v49 = vrot.slane %v709_v16, 1  ;;  %v847_v17 = vadd.f32 %v846_v42, %v845_v20 }
 0x19c   :  { %v811_v50 = vrot.slane %v810_v57, 1  ;;  %v674_v48 = vadd.f32 %v673_v23, %v672_v38  ;;  %2426 = vmatpush.bf16.msra.mxu3 %v2371_v26  ;;  %1202 = vmatpush.bf16.msra.mxu2 %v2371_v26  ;;  %v2368_v23 = vld [vmem:[#allocation10 + $0x8] sm:$0xff]  ;;  %v858_v26 = vld [vmem:[%s4064_s3] sm:$0x3] }
 0x19d   :  { %v711_v6 = vadd.f32 %v710_v49, %v709_v16  ;;  %v848_v56 = vrot.slane %v847_v17, 1  ;;  %v2369_v16 = vld [vmem:[#allocation10 + $0x10] sm:$0xff] }
 0x19e   :  { %v812_v37 = vadd.f32 %v811_v50, %v810_v57  ;;  %v3347_v39 = vmul.f32 0.00390625, %v674_v48 }
 0x19f   :  { %v849_v18 = vadd.f32 %v848_v56, %v847_v17  ;;  %v851_v54 = vmul.f32 0.00390625, %v711_v6  ;;  %v2367_v6 = vld [vmem:[#allocation10] sm:$0xff] }
 0x1a0   :  { %v852_v61 = vmul.f32 0.00390625, %v812_v37  ;;  %v854_v40 = vmul.f32 %v3347_v39, %v3347_v39  ;;  %2427 = vmatpush.bf16.msra.mxu3 %v2370_v19  ;;  %1203 = vmatpush.bf16.msra.mxu2 %v2370_v19  ;;  %v2382_v37 = vld [vmem:[#allocation10 + $0x78] sm:$0xff] }
 0x1a1   :  { %v853_v60 = vmul.f32 0.00390625, %v849_v18  ;;  %v855_v41 = vmul.f32 %v851_v54, %v851_v54 }
 0x1a2   :  { %v856_v28 = vsub.f32 %v852_v61, %v854_v40  ;;  %v2381_v40 = vld [vmem:[#allocation10 + $0x70] sm:$0xff] }
 0x1a3   :  { %v857_v20 = vsub.f32 %v853_v60, %v855_v41 }
 0x1a4   :  { %v859_v38 = vadd.f32 1e-05, %v856_v28  ;;  %2428 = vmatpush.bf16.msra.mxu3 %v2369_v16  ;;  %1204 = vmatpush.bf16.msra.mxu2 %v2369_v16 }
 0x1a5   :  { %v860_v57 = vadd.f32 1e-05, %v857_v20 }
 0x1a6   :  { %2448 = vrsqrt.f32 %v859_v38  ;;  %vm867_vm4 = vweird.f32 %v859_v38 }
 0x1a7   :  { %2450 = vrsqrt.f32 %v860_v57  ;;  %vm877_vm2 = vweird.f32 %v860_v57 }
 0x1a8   :  { %2429 = vmatpush.bf16.msra.mxu3 %v2368_v23  ;;  %1205 = vmatpush.bf16.msra.mxu2 %v2368_v23 }
 0x1ac   :  { %v2449_v42 = vpop.eup %2448  ;;  %2430 = vmatpush.bf16.msra.mxu3 %v2367_v6  ;;  %1206 = vmatpush.bf16.msra.mxu2 %v2367_v6 }
 0x1ad   :  { %v2451_v34 = vpop.eup %2450  ;;  %v862_v49 = vmul.f32 %v2449_v42, %v859_v38  ;;  %vm868_vm1 = vweird.f32 %v2449_v42  ;;  %v2380_v38 = vld [vmem:[#allocation10 + $0x68] sm:$0xff] }
 0x1ae   :  { %v872_v17 = vmul.f32 %v2451_v34, %v860_v57  ;;  %vm878_vm0 = vweird.f32 %v2451_v34  ;;  %vm869_vm6 = vmor %vm867_vm4, %vm868_vm1 }
 0x1af   :  { %v863_v50 = vmul.f32 %v2449_v42, %v862_v49  ;;  %vm879_vm3 = vmor %vm877_vm2, %vm878_vm0 }
 0x1b0   :  { %v873_v48 = vmul.f32 %v2451_v34, %v872_v17  ;;  %1288 = vmatpush.bf16.msrb.mxu3 %v2382_v37 }
 0x1b1   :  { %v864_v56 = vmul.f32 0.5, %v863_v50  ;;  %v888_v50 = vld [vmem:[#allocation8] sm:$0x3] }
 0x1b2   :  { %v874_v25 = vmul.f32 0.5, %v873_v48 }
 0x1b3   :  { %v865_v18 = vsub.f32 1.5, %v864_v56  ;;  %v2379_v56 = vld [vmem:[#allocation10 + $0x60] sm:$0xff] }
 0x1b4   :  { %v875_v61 = vsub.f32 1.5, %v874_v25  ;;  %1289 = vmatpush.bf16.msrb.mxu3 %v2381_v40 }
 0x1b5   :  { %v866_v60 = vmul.f32 %v2449_v42, %v865_v18 }
 0x1b6   :  { %v876_v41 = vmul.f32 %v2451_v34, %v875_v61 }
 0x1b7   :  { %v870_v19 = vsel %vm869_vm6, %v2449_v42, %v866_v60 }
 0x1b8   :  { %v880_v28 = vsel %vm879_vm3, %v2451_v34, %v876_v41  ;;  %v2390_v34 = vld [vmem:[#allocation11 + $0x38] sm:$0xff]  ;;  %1290 = vmatpush.bf16.msrb.mxu3 %v2380_v38  ;;  %v4128_v41 = vld [vmem:[#allocation35_spill] sm:$0xff]  ;;  %v4130_v38 = vld [vmem:[#allocation24_spill] sm:$0xff] }
 0x1b9   :  { %v883_v20 = vrot.slane %v880_v28, 7  ;;  %1493 = vmatpush.bf16.msrb.mxu0 %v2390_v34  ;;  %v4131_v34 = vld [vmem:[#allocation23_spill] sm:$0xff] }
 0x1bb   :  { %v885_v16 = vsel %vm884_vm5, %v870_v19, %v883_v20 }
 0x1bc   :  { %v887_v23 = vmul.f32 %v885_v16, %v858_v26  ;;  %1291 = vmatpush.bf16.msrb.mxu3 %v2379_v56  ;;  %v4129_v26 = vld [vmem:[#allocation38_spill] sm:$0xff] }
 0x1be   :  { %v3355_v49 = vperm.slane %v887_v23, 0  ;;  %v3357_v17 = vperm.slane %v887_v23, 1 }
 0x1c0   :  { %v895_v57 = vmul.f32 %v3357_v17, %v851_v54  ;;  %v894_v48 = vmul.f32 %v3355_v49, %v3347_v39  ;;  %v3365_v25 = vmul.f32 %v3357_v17, %v3333_v12  ;;  %v903_v54 = vmul.f32 %v3357_v17, %v2889_v55 }
 0x1c1   :  { %v905_v18 = vmul.f32 %v3357_v17, %v2883_v51  ;;  %v3373_v39 = vmul.f32 %v3357_v17, %v2895_v58  ;;  %v3377_v61 = vmul.f32 %v3357_v17, %v2907_v1  ;;  %v3381_v40 = vmul.f32 %v3357_v17, %v2927_v44  ;;  %v4127_v44 = vld [vmem:[#allocation33_spill] sm:$0xff] }
 0x1c2   :  { %v898_v6 = vrot.slane %v895_v57, 7  ;;  %v3385_v12 = vmul.f32 %v3357_v17, %v2943_v63  ;;  %v3393_v51 = vmul.f32 %v3357_v17, %v2971_v47  ;;  %v3397_v58 = vmul.f32 %v3357_v17, %v2985_v8 }
 0x1c3   :  { %v3401_v1 = vmul.f32 %v3357_v17, %v3013_v46  ;;  %v3405_v63 = vmul.f32 %v3357_v17, %v4127_v44  ;;  %v3409_v28 = vmul.f32 %v3357_v17, %v4128_v41  ;;  %v950_v47 = vmul.f32 %v3355_v49, %v2975_v53 }
 0x1c4   :  { %v899_v42 = vsel %vm884_vm5, %v894_v48, %v898_v6  ;;  %v3415_v8 = vmul.f32 %v3357_v17, %v3077_v30  ;;  %v3419_v20 = vmul.f32 %v3357_v17, %v4129_v26  ;;  %v3423_v46 = vmul.f32 %v3357_v17, %v3111_v35  ;;  %v4149_v6 = vld [vmem:[#allocation46_spill] sm:$0xff] }
 0x1c5   :  { %v901_v37 = vsub.f32 %v888_v50, %v899_v42  ;;  %v952_v19 = vmul.f32 %v3355_v49, %v2987_v4  ;;  %v3429_v16 = vmul.f32 %v3357_v17, %v3123_v31  ;;  %v3440_v57 = vmul.f32 %v3357_v17, %v3139_v22 }
 0x1c6   :  { %v902_v4 = vmul.f32 %v3355_v49, %v4130_v38  ;;  %v904_v31 = vmul.f32 %v3355_v49, %v4131_v34  ;;  %v3449_v50 = vmul.f32 %v3357_v17, %v3153_v9  ;;  %v3453_v48 = vmul.f32 %v3357_v17, %v3177_v7 }
 0x1c7   :  { %v3387_v55 = vperm.slane %v901_v37, 0  ;;  %v3389_v60 = vperm.slane %v901_v37, 1  ;;  %v3457_v22 = vmul.f32 %v3357_v17, %v3186_v15  ;;  %v3463_v56 = vmul.f32 %v3357_v17, %v3198_v33 }
 0x1c8   :  { %v3469_v7 = vmul.f32 %v3357_v17, %v3210_v62  ;;  %v3473_v15 = vmul.f32 %v3357_v17, %v3221_v2  ;;  %v3481_v33 = vmul.f32 %v3357_v17, %v3259_v13  ;;  %v4132_v62 = vld [vmem:[#allocation25_spill] sm:$0xff]  ;;  %v3497_v13 = vmul.f32 %v3357_v17, %v3274_v32 }
 0x1c9   :  { %v3432_v53 = vadd.f32 %v3389_v60, %v903_v54  ;;  %v3435_v30 = vadd.f32 %v3389_v60, %v905_v18  ;;  %v1019_v23 = vadd.f32 %v3387_v55, %v950_v47  ;;  %v1021_v35 = vadd.f32 %v3387_v55, %v952_v19  ;;  %v4133_v47 = vld [vmem:[#allocation26_spill] sm:$0xff] }
 0x1ca   :  { %v971_v42 = vadd.f32 %v3387_v55, %v902_v4  ;;  %v973_v9 = vadd.f32 %v3387_v55, %v904_v31  ;;  %v3477_v54 = vmul.f32 %v3357_v17, %v3231_v36  ;;  %v3485_v18 = vmul.f32 %v3357_v17, %v3256_v10  ;;  %v4134_v4 = vld [vmem:[#allocation31_spill] sm:$0xff] }
 0x1cb   :  { %v1059_v37 = vpack.c.bf16 %v1021_v35, %v1019_v23  ;;  %v906_v41 = vmul.f32 %v3355_v49, %v4132_v62  ;;  %v908_v2 = vmul.f32 %v3355_v49, %v4133_v47  ;;  %v3493_v36 = vmul.f32 %v3357_v17, %v3266_v59  ;;  %v2378_v35 = vld [vmem:[#allocation10 + $0x58] sm:$0xff]  ;;  %v4135_v31 = vld [vmem:[#allocation27_spill] sm:$0xff] }
 0x1cc   :  { %v1035_v44 = vpack.c.bf16 %v973_v9, %v971_v42  ;;  %v954_v10 = vmul.f32 %v3355_v49, %v3023_v45  ;;  %v956_v26 = vmul.f32 %v3355_v49, %v3035_v43  ;;  %v3505_v19 = vmul.f32 %v3357_v17, %v3285_v52  ;;  %v2389_v45 = vld [vmem:[#allocation11 + $0x30] sm:$0xff]  ;;  %v4136_v9 = vld [vmem:[#allocation28_spill] sm:$0xff]  ;;  %1292 = vmatpush.bf16.msrb.mxu3 %v2378_v35 }
 0x1cd   :  { %1267 = vmatmul.bf16.vlgmr.msra.gmra.mxu3 %v1059_v37  ;;  %v3509_v23 = vmul.f32 %v3357_v17, %v3300_v14  ;;  %v3512_v59 = vadd.f32 %v3387_v55, %v906_v41  ;;  %v3515_v32 = vadd.f32 %v3387_v55, %v908_v2  ;;  %v3519_v43 = vmul.f32 %v3357_v17, %v3310_v21  ;;  %v2377_v21 = vld [vmem:[#allocation10 + $0x50] sm:$0xff]  ;;  %v4138_v2 = vld [vmem:[#allocation34_spill] sm:$0xff] }
 0x1ce   :  { %1207 = vmatmul.bf16.vlgmr.msra.gmra.mxu2 %v1035_v44  ;;  %v1023_v52 = vadd.f32 %v3387_v55, %v954_v10  ;;  %v1025_v38 = vadd.f32 %v3387_v55, %v956_v26  ;;  %v918_v14 = vmul.f32 %v3355_v49, %v4134_v4  ;;  %v3527_v34 = vmul.f32 %v3357_v17, %v3322_v0  ;;  %v4137_v0 = vld [vmem:[#allocation32_spill] sm:$0xff] }
 0x1cf   :  { %v3531_v42 = vmul.f32 %v3355_v49, %v4135_v31  ;;  %v3535_v37 = vmul.f32 %v3355_v49, %v4136_v9  ;;  %1494 = vmatpush.bf16.msrb.mxu0 %v2389_v45  ;;  %v3539_v44 = vmul.f32 %v3355_v49, %v3272_v5  ;;  %v3543_v62 = vmul.f32 %v3355_v49, %v3283_v29  ;;  %v4139_v26 = vld [vmem:[#allocation36_spill] sm:$0xff] }
 0x1d0   :  { %v920_v17 = vmul.f32 %v3355_v49, %v4137_v0  ;;  %v3548_v41 = vadd.f32 %v3387_v55, %v918_v14  ;;  %v1037_v47 = vpack.c.bf16 %v3515_v32, %v3512_v59  ;;  %v922_v10 = vmul.f32 %v3355_v49, %v4138_v2  ;;  %v4140_v14 = vld [vmem:[#allocation37_spill] sm:$0xff]  ;;  %1293 = vmatpush.bf16.msrb.mxu3 %v2377_v21  ;;  %v4147_v9 = vld [vmem:[#allocation44_spill] sm:$0xff] }
 0x1d1   :  { %v924_v5 = vmul.f32 %v3355_v49, %v4139_v26  ;;  %v3558_v35 = vadd.f32 %v3389_v60, %v3373_v39  ;;  %v1061_v29 = vpack.c.bf16 %v1025_v38, %v1023_v52  ;;  %v3565_v4 = vadd.f32 %v3389_v60, %v3377_v61  ;;  %v4141_v39 = vld [vmem:[#allocation39_spill] sm:$0xff]  ;;  %v4143_v26 = vld [vmem:[#allocation41_spill] sm:$0xff] }
 0x1d2   :  { %v3561_v45 = vadd.f32 %v3387_v55, %v920_v17  ;;  %v926_v59 = vmul.f32 %v3355_v49, %v4140_v14  ;;  %v3570_v32 = vadd.f32 %v3387_v55, %v922_v10  ;;  %v928_v52 = vmul.f32 %v3355_v49, %v4141_v39  ;;  %v4144_v39 = vld [vmem:[#allocation42_spill] sm:$0xff]  ;;  %v4145_v14 = vld [vmem:[#allocation43_spill] sm:$0xff] }
 0x1d3   :  { %v3573_v31 = vadd.f32 %v3387_v55, %v924_v5  ;;  %v3579_v38 = vadd.f32 %v3389_v60, %v3381_v40  ;;  %v3590_v0 = vadd.f32 %v3389_v60, %v3385_v12  ;;  %v4142_v40 = vld [vmem:[#allocation40_spill] sm:$0xff]  ;;  %v932_v5 = vmul.f32 %v3355_v49, %v4143_v26 }
 0x1d4   :  { %v3586_v21 = vadd.f32 %v3387_v55, %v926_v59  ;;  %v3595_v2 = vadd.f32 %v3387_v55, %v928_v52  ;;  %v930_v10 = vmul.f32 %v3355_v49, %v4142_v40  ;;  %v3605_v59 = vadd.f32 %v3389_v60, %v3393_v51 }
 0x1d5   :  { %v3609_v12 = vadd.f32 %v3389_v60, %v3397_v58  ;;  %v934_v52 = vmul.f32 %v3355_v49, %v4144_v39  ;;  %v3619_v26 = vadd.f32 %v3387_v55, %v932_v5  ;;  %v936_v51 = vmul.f32 %v3355_v49, %v4145_v14  ;;  %v4148_v5 = vld [vmem:[#allocation45_spill] sm:$0xff] }
 0x1d6   :  { %v3616_v17 = vadd.f32 %v3387_v55, %v930_v10  ;;  %v3630_v39 = vadd.f32 %v3389_v60, %v3401_v1  ;;  %v3634_v10 = vadd.f32 %v3389_v60, %v3405_v63  ;;  %v938_v14 = vmul.f32 %v3355_v49, %v3181_v24  ;;  %v4152_v24 = vld [vmem:[#allocation29_spill] sm:$0xff] }
 0x1d7   :  { %v3626_v58 = vadd.f32 %v3387_v55, %v934_v52  ;;  %v3639_v40 = vadd.f32 %v3387_v55, %v936_v51  ;;  %v940_v52 = vmul.f32 %v3355_v49, %v4147_v9  ;;  %v3649_v61 = vadd.f32 %v3389_v60, %v3409_v28 }
 0x1d8   :  { %4146 = vst [vmem:[#allocation33_spill] sm:$0xff] %v3630_v39  ;;  %v3653_v63 = vadd.f32 %v3389_v60, %v3415_v8  ;;  %v942_v51 = vmul.f32 %v3355_v49, %v4148_v5  ;;  %v3660_v9 = vadd.f32 %v3387_v55, %v938_v14  ;;  %v944_v28 = vmul.f32 %v3355_v49, %v4149_v6  ;;  %v2376_v14 = vld [vmem:[#allocation10 + $0x48] sm:$0xff] }
 0x1d9   :  { %v3663_v1 = vadd.f32 %v3387_v55, %v940_v52  ;;  %v3678_v5 = vadd.f32 %v3389_v60, %v3423_v46  ;;  %v948_v8 = vmul.f32 %v3355_v49, %v3254_v3  ;;  %v3693_v46 = vadd.f32 %v3389_v60, %v3429_v16  ;;  %1294 = vmatpush.bf16.msrb.mxu3 %v2376_v14 }
 0x1da   :  { %v3670_v39 = vadd.f32 %v3387_v55, %v942_v51  ;;  %v3683_v6 = vadd.f32 %v3387_v55, %v944_v28  ;;  %v946_v51 = vmul.f32 %v3355_v49, %v3226_v27  ;;  %v3701_v28 = vadd.f32 %v3389_v60, %v3449_v50  ;;  %v2375_v27 = vld [vmem:[#allocation10 + $0x40] sm:$0xff] }
 0x1db   :  { %v3713_v16 = vadd.f32 %v3389_v60, %v3453_v48  ;;  %v3719_v50 = vadd.f32 %v3389_v60, %v3457_v22  ;;  %v3723_v14 = vadd.f32 %v3389_v60, %v3463_v56  ;;  %v3739_v22 = vadd.f32 %v3389_v60, %v3477_v54 }
 0x1dc   :  { %v3706_v52 = vadd.f32 %v3387_v55, %v946_v51  ;;  %v3727_v51 = vadd.f32 %v3389_v60, %v3469_v7  ;;  %v3745_v7 = vadd.f32 %v3389_v60, %v3481_v33  ;;  %v3753_v48 = vadd.f32 %v3389_v60, %v3493_v36  ;;  %v2388_v36 = vld [vmem:[#allocation11 + $0x28] sm:$0xff] }
 0x1dd   :  { %1272 = vmatmul.bf16.gmra.mxu3 %v1061_v29  ;;  %v3674_v29 = vadd.f32 %v3389_v60, %v3419_v20  ;;  %v3709_v20 = vadd.f32 %v3387_v55, %v948_v8  ;;  %v3749_v8 = vadd.f32 %v3389_v60, %v3485_v18  ;;  %v3759_v54 = vadd.f32 %v3389_v60, %v3497_v13 }
 0x1de   :  { %1212 = vmatmul.bf16.gmra.mxu2 %v1037_v47  ;;  %v3697_v47 = vadd.f32 %v3389_v60, %v3440_v57  ;;  %v3735_v57 = vadd.f32 %v3389_v60, %v3473_v15  ;;  %1295 = vmatpush.bf16.msrb.mxu3 %v2375_v27  ;;  %v3763_v33 = vadd.f32 %v3389_v60, %v3505_v19 }
 0x1df   :  { %v3767_v18 = vadd.f32 %v3389_v60, %v3509_v23  ;;  %v3775_v15 = vadd.f32 %v3389_v60, %v3519_v43  ;;  %v3779_v13 = vadd.f32 %v3389_v60, %v3527_v34  ;;  %v1027_v19 = vadd.f32 %v3387_v55, %v3539_v44  ;;  %1495 = vmatpush.bf16.msrb.mxu0 %v2388_v36 }
 0x1e0   :  { %v1029_v23 = vadd.f32 %v3387_v55, %v3543_v62  ;;  %v3789_v27 = vadd.f32 %v3389_v60, %v3365_v25  ;;  %v979_v34 = vadd.f32 %v3387_v55, %v3531_v42  ;;  %v981_v56 = vadd.f32 %v3387_v55, %v3535_v37  ;;  %v4151_v60 = vld [vmem:[#allocation47_spill] sm:$0xff] }
 0x1e1   :  { %4150 = vst [vmem:[#allocation35_spill] sm:$0xff] %v3767_v18  ;;  %v962_v25 = vmul.f32 %v3355_v49, %v3316_v11  ;;  %v964_v43 = vmul.f32 %v3355_v49, %v4151_v60  ;;  %v914_v42 = vmul.f32 %v3355_v49, %v4152_v24  ;;  %v4153_v18 = vld [vmem:[#allocation30_spill] sm:$0xff]  ;;  %v2387_v11 = vld [vmem:[#allocation11 + $0x20] sm:$0xff]  ;;  %v4154_v24 = vpack.c.bf16 %v3435_v30, %v3432_v53  ;;  %v2385_v30 = vld [vmem:[#allocation11 + $0x10] sm:$0xff] }
 0x1e2   :  { %v1063_v62 = vpack.c.bf16 %v1029_v23, %v1027_v19  ;;  %v1039_v3 = vpack.c.bf16 %v981_v56, %v979_v34  ;;  %v916_v37 = vmul.f32 %v3355_v49, %v4153_v18  ;;  %v4155_v49 = vpack.c.bf16 %v3561_v45, %v3548_v41  ;;  %v2398_v45 = vld [vmem:[#allocation13 + $0x38] sm:$0xff]  ;;  %v2396_v60 = vld [vmem:[#allocation13 + $0x28] sm:$0xff] }
 0x1e3   :  { %v1031_v44 = vadd.f32 %v3387_v55, %v962_v25  ;;  %v1033_v56 = vadd.f32 %v3387_v55, %v964_v43  ;;  %1496 = vmatpush.bf16.msrb.mxu0 %v2387_v11  ;;  %v4156_v18 = vpack.c.bf16 %v3565_v4, %v3558_v35  ;;  %v2386_v43 = vld [vmem:[#allocation11 + $0x18] sm:$0xff]  ;;  %v4158_v34 = vpack.c.bf16 %v3590_v0, %v3579_v38  ;;  %v4162_v4 = vld [vmem:[#allocation33_spill] sm:$0xff]  ;;  %v2384_v38 = vld [vmem:[#allocation11 + $0x8] sm:$0xff] }
 0x1e4   :  { %v985_v36 = vadd.f32 %v3387_v55, %v916_v37  ;;  %v4159_v53 = vpack.c.bf16 %v3595_v2, %v3586_v21  ;;  %v4160_v41 = vpack.c.bf16 %v3609_v12, %v3605_v59  ;;  %v4161_v35 = vpack.c.bf16 %v3619_v26, %v3616_v17  ;;  %1698 = vmatpush.bf16.msrb.mxu1 %v2398_v45  ;;  %v2397_v26 = vld [vmem:[#allocation13 + $0x30] sm:$0xff]  ;;  %v2394_v45 = vld [vmem:[#allocation13 + $0x18] sm:$0xff] }
 0x1e5   :  { %v1065_v19 = vpack.c.bf16 %v1033_v56, %v1031_v44  ;;  %v4165_v17 = vpack.c.bf16 %v3653_v63, %v3649_v61  ;;  %v4166_v59 = vpack.c.bf16 %v3663_v1, %v3660_v9  ;;  %v4167_v44 = vpack.c.bf16 %v3678_v5, %v3674_v29 }
 0x1e6   :  { %v4168_v61 = vpack.c.bf16 %v3683_v6, %v3670_v39  ;;  %v4169_v25 = vpack.c.bf16 %v3697_v47, %v3693_v46  ;;  %v4171_v6 = vpack.c.bf16 %v3713_v16, %v3701_v28  ;;  %v3881_v46 = vld [vmem:[%s4067_s6] ss:$0 sm:$0xff]  ;;  %v2395_v47 = vld [vmem:[#allocation13 + $0x20] sm:$0xff] }
 0x1e7   :  { %1497 = vmatpush.bf16.msrb.mxu0 %v2386_v43 }
 0x1e8   :  { %1699 = vmatpush.bf16.msrb.mxu1 %v2397_v26 }
 0x1eb   :  { %1498 = vmatpush.bf16.msrb.mxu0 %v2385_v30 }
 0x1ec   :  { %1700 = vmatpush.bf16.msrb.mxu1 %v2396_v60 }
 0x1ed   :  { %1277 = vmatmul.bf16.gmra.mxu3 %v1063_v62 }
 0x1ee   :  { %1217 = vmatmul.bf16.gmra.mxu2 %v1039_v3  ;;  %v983_v3 = vadd.f32 %v3387_v55, %v914_v42  ;;  %v4157_v55 = vpack.c.bf16 %v3573_v31, %v3570_v32  ;;  %v4163_v32 = vpack.c.bf16 %v3634_v10, %v4162_v4  ;;  %v4164_v31 = vpack.c.bf16 %v3639_v40, %v3626_v58  ;;  %v2383_v40 = vld [vmem:[#allocation11] sm:$0xff] }
 0x1ef   :  { %1499 = vmatpush.bf16.msrb.mxu0 %v2384_v38  ;;  %v4170_v42 = vpack.c.bf16 %v3709_v20, %v3706_v52  ;;  %v4173_v4 = vpack.c.bf16 %v3735_v57, %v3727_v51 }
 0x1f0   :  { %v1041_v23 = vpack.c.bf16 %v985_v36, %v983_v3  ;;  %1701 = vmatpush.bf16.msrb.mxu1 %v2395_v47 }
 0x1f3   :  { %1500 = vmatpush.bf16.msrb.mxu0 %v2383_v40 }
 0x1f4   :  { %1702 = vmatpush.bf16.msrb.mxu1 %v2394_v45 }
 0x1fd   :  { %1282 = vmatmul.bf16.gmra.mxu3 %v1065_v19 }
 0x1fe   :  { %1222 = vmatmul.bf16.gmra.mxu2 %v1041_v23 }
 0x20d   :  { %1296 = vmatmul.bf16.vlgmr.msrb.gmra.mxu3 %v4154_v24  ;;  %v4172_v24 = vpack.c.bf16 %v3723_v14, %v3719_v50 }
 0x20e   :  { %1227 = vmatmul.bf16.gmra.mxu2 %v4155_v49 }
 0x21d   :  { %1301 = vmatmul.bf16.gmra.mxu3 %v4156_v18 }
 0x21e   :  { %1232 = vmatmul.bf16.gmra.mxu2 %v4157_v55 }
 0x22d   :  { %1306 = vmatmul.bf16.gmra.mxu3 %v4158_v34 }
 0x22e   :  { %1237 = vmatmul.bf16.gmra.mxu2 %v4159_v53 }
 0x23d   :  { %1311 = vmatmul.bf16.gmra.mxu3 %v4160_v41 }
 0x23e   :  { %1242 = vmatmul.bf16.gmra.mxu2 %v4161_v35 }
 0x24d   :  { %1316 = vmatmul.bf16.gmra.mxu3 %v4163_v32 }
 0x24e   :  { %1247 = vmatmul.bf16.gmra.mxu2 %v4164_v31 }
 0x250   :  { %v3841_v21 = vpop.f32.mrf.mxu3 }
 0x251   :  { %v1208_v2 = vpop.f32.mrf.mxu2 }
 0x252   :  { %v1209_v52 = vadd.f32 %v3881_v46, %v1208_v2 }
 0x258   :  { %v3843_v0 = vpop.f32.mrf.mxu3 }
 0x259   :  { %v1210_v58 = vpop.f32.mrf.mxu2 }
 0x25a   :  { %v1211_v20 = vadd.f32 %v3881_v46, %v1210_v58 }
 0x25d   :  { %1321 = vmatmul.bf16.gmra.mxu3 %v4165_v17 }
 0x25e   :  { %1252 = vmatmul.bf16.gmra.mxu2 %v4166_v59 }
 0x260   :  { %v3851_v12 = vpop.f32.mrf.mxu3 }
 0x261   :  { %v1213_v1 = vpop.f32.mrf.mxu2 }
 0x262   :  { %v1214_v55 = vadd.f32 %v3881_v46, %v1213_v1  ;;  %v2393_v1 = vld [vmem:[#allocation13 + $0x10] sm:$0xff] }
 0x263   :  { %1703 = vmatpush.bf16.msrb.mxu1 %v2393_v1 }
 0x268   :  { %v3853_v10 = vpop.f32.mrf.mxu3 }
 0x269   :  { %v1215_v62 = vpop.f32.mrf.mxu2 }
 0x26a   :  { %v1216_v43 = vadd.f32 %v3881_v46, %v1215_v62 }
 0x26d   :  { %1326 = vmatmul.bf16.gmra.mxu3 %v4167_v44  ;;  %v4174_v44 = vpack.c.bf16 %v3745_v7, %v3739_v22  ;;  %v4175_v22 = vpack.c.bf16 %v3753_v48, %v3749_v8  ;;  %v4176_v8 = vpack.c.bf16 %v3763_v33, %v3759_v54  ;;  %v2392_v48 = vld [vmem:[#allocation13 + $0x8] sm:$0xff]  ;;  %v2405_v33 = vld [vmem:[#allocation14 + $0x30] sm:$0xff] }
 0x26e   :  { %1257 = vmatmul.bf16.gmra.mxu2 %v4168_v61  ;;  %1704 = vmatpush.bf16.msrb.mxu1 %v2392_v48 }
 0x270   :  { %v3861_v63 = vpop.f32.mrf.mxu3 }
 0x271   :  { %v1218_v39 = vpop.f32.mrf.mxu2 }
 0x272   :  { %v1219_v31 = vadd.f32 %v3881_v46, %v1218_v39 }
 0x278   :  { %v3863_v9 = vpop.f32.mrf.mxu3 }
 0x279   :  { %v1220_v37 = vpop.f32.mrf.mxu2 }
 0x27a   :  { %v1221_v38 = vadd.f32 %v3881_v46, %v1220_v37 }
 0x27d   :  { %1331 = vmatmul.bf16.gmra.mxu3 %v4169_v25 }
 0x27e   :  { %1262 = vmatmul.bf16.gmra.mxu2 %v4170_v42 }
 0x280   :  { %v3871_v29 = vpop.f32.mrf.mxu3 }
 0x281   :  { %v1223_v23 = vpop.f32.mrf.mxu2 }
 0x282   :  { %v1224_v62 = vadd.f32 %v3881_v46, %v1223_v23 }
 0x288   :  { %v3873_v5 = vpop.f32.mrf.mxu3 }
 0x289   :  { %v1225_v18 = vpop.f32.mrf.mxu2 }
 0x28a   :  { %v1226_v25 = vadd.f32 %v3881_v46, %v1225_v18 }
 0x28d   :  { %1336 = vmatmul.bf16.gmra.mxu3 %v4171_v6 }
 0x290   :  { %v1297_v56 = vpop.f32.mrf.mxu3 }
 0x291   :  { %v1298_v3 = vadd.f32 %v1297_v56, %v1209_v52  ;;  %v1228_v50 = vpop.f32.mrf.mxu2  ;;  %v2406_v52 = vld [vmem:[#allocation14 + $0x38] sm:$0xff] }
 0x292   :  { %1903 = vmatpush.bf16.msrb.mxu2 %v2406_v52 }
 0x293   :  { %v1377_v11 = vmax.f32 %v1298_v3, 0.0 }
 0x296   :  { %1904 = vmatpush.bf16.msrb.mxu2 %v2405_v33 }
 0x298   :  { %v1299_v36 = vpop.f32.mrf.mxu3 }
 0x299   :  { %v1300_v19 = vadd.f32 %v1299_v36, %v1211_v20  ;;  %v1230_v2 = vpop.f32.mrf.mxu2  ;;  %v1229_v20 = vadd.f32 %v3881_v46, %v1228_v50 }
 0x29a   :  { %v1231_v36 = vadd.f32 %v3881_v46, %v1230_v2 }
 0x29b   :  { %v1378_v28 = vmax.f32 %v1300_v19, 0.0 }
 0x29d   :  { %v1409_v16 = vpack.c.bf16 %v1378_v28, %v1377_v11  ;;  %1341 = vmatmul.bf16.gmra.mxu3 %v4172_v24 }
 0x29f   :  { %1501 = vmatmul.bf16.vlgmr.msrb.gmra.mxu0 %v1409_v16 }
 0x2a0   :  { %v1302_v49 = vpop.f32.mrf.mxu3 }
 0x2a1   :  { %v1303_v34 = vadd.f32 %v1302_v49, %v1214_v55  ;;  %v1233_v61 = vpop.f32.mrf.mxu2 }
 0x2a2   :  { %v1234_v55 = vadd.f32 %v3881_v46, %v1233_v61 }
 0x2a3   :  { %v1379_v41 = vmax.f32 %v1303_v34, 0.0 }
 0x2a8   :  { %v1304_v53 = vpop.f32.mrf.mxu3 }
 0x2a9   :  { %v1305_v30 = vadd.f32 %v1304_v53, %v1216_v43  ;;  %v1235_v56 = vpop.f32.mrf.mxu2 }
 0x2aa   :  { %v1236_v43 = vadd.f32 %v3881_v46, %v1235_v56 }
 0x2ab   :  { %v1380_v35 = vmax.f32 %v1305_v30, 0.0 }
 0x2ad   :  { %1346 = vmatmul.bf16.gmra.mxu3 %v4173_v4  ;;  %v1410_v32 = vpack.c.bf16 %v1380_v35, %v1379_v41 }
 0x2af   :  { %1506 = vmatmul.bf16.gmra.mxu0 %v1410_v32  ;;  %v4177_v32 = vld [vmem:[#allocation35_spill] sm:$0xff] }
 0x2b0   :  { %v1307_v14 = vpop.f32.mrf.mxu3  ;;  %v4178_v54 = vpack.c.bf16 %v3775_v15, %v4177_v32  ;;  %v4179_v15 = vpack.c.bf16 %v3789_v27, %v3779_v13 }
 0x2b1   :  { %v1308_v17 = vadd.f32 %v1307_v14, %v1219_v31  ;;  %v1238_v3 = vpop.f32.mrf.mxu2  ;;  %v2391_v14 = vld [vmem:[#allocation13] sm:$0xff] }
 0x2b2   :  { %1705 = vmatpush.bf16.msrb.mxu1 %v2391_v14 }
 0x2b3   :  { %v1381_v40 = vmax.f32 %v1308_v17, 0.0 }
 0x2b8   :  { %v1309_v59 = vpop.f32.mrf.mxu3 }
 0x2b9   :  { %v1310_v26 = vadd.f32 %v1309_v59, %v1221_v38  ;;  %v1240_v49 = vpop.f32.mrf.mxu2  ;;  %v1239_v38 = vadd.f32 %v3881_v46, %v1238_v3 }
 0x2ba   :  { %v1241_v17 = vadd.f32 %v3881_v46, %v1240_v49 }
 0x2bb   :  { %v1382_v58 = vmax.f32 %v1310_v26, 0.0 }
 0x2bd   :  { %1351 = vmatmul.bf16.gmra.mxu3 %v4174_v44  ;;  %v1411_v57 = vpack.c.bf16 %v1382_v58, %v1381_v40 }
 0x2bf   :  { %1511 = vmatmul.bf16.gmra.mxu0 %v1411_v57 }
 0x2c0   :  { %v1312_v51 = vpop.f32.mrf.mxu3 }
 0x2c1   :  { %v1313_v60 = vadd.f32 %v1312_v51, %v1224_v62  ;;  %v1243_v41 = vpop.f32.mrf.mxu2 }
 0x2c2   :  { %v1244_v61 = vadd.f32 %v3881_v46, %v1243_v41 }
 0x2c3   :  { %v1383_v6 = vmax.f32 %v1313_v60, 0.0 }
 0x2c8   :  { %v1314_v42 = vpop.f32.mrf.mxu3 }
 0x2c9   :  { %v1315_v39 = vadd.f32 %v1314_v42, %v1226_v25  ;;  %v1245_v31 = vpop.f32.mrf.mxu2 }
 0x2ca   :  { %v1246_v1 = vadd.f32 %v3881_v46, %v1245_v31 }
 0x2cb   :  { %v1384_v37 = vmax.f32 %v1315_v39, 0.0  ;;  %v2404_v39 = vld [vmem:[#allocation14 + $0x28] sm:$0xff] }
 0x2cc   :  { %1905 = vmatpush.bf16.msrb.mxu2 %v2404_v39 }
 0x2cd   :  { %1356 = vmatmul.bf16.gmra.mxu3 %v4175_v22  ;;  %v1412_v7 = vpack.c.bf16 %v1384_v37, %v1383_v6 }
 0x2cf   :  { %1516 = vmatmul.bf16.gmra.mxu0 %v1412_v7 }
 0x2d0   :  { %v1317_v47 = vpop.f32.mrf.mxu3 }
 0x2d1   :  { %v1318_v19 = vadd.f32 %v1317_v47, %v1229_v20  ;;  %v1248_v57 = vpop.f32.mrf.mxu2 }
 0x2d2   :  { %v1249_v13 = vadd.f32 %v3881_v46, %v1248_v57 }
 0x2d3   :  { %v1385_v28 = vmax.f32 %v1318_v19, 0.0 }
 0x2d8   :  { %v1319_v23 = vpop.f32.mrf.mxu3 }
 0x2d9   :  { %v1320_v11 = vadd.f32 %v1319_v23, %v1231_v36  ;;  %v1250_v25 = vpop.f32.mrf.mxu2 }
 0x2da   :  { %v1251_v7 = vadd.f32 %v3881_v46, %v1250_v25 }
 0x2db   :  { %v1386_v16 = vmax.f32 %v1320_v11, 0.0 }
 0x2dd   :  { %v1413_v24 = vpack.c.bf16 %v1386_v16, %v1385_v28  ;;  %1361 = vmatmul.bf16.gmra.mxu3 %v4176_v8  ;;  %v3925_v28 = vld [vmem:[%s4069_s8] ss:$0 sm:$0xff]  ;;  %v2403_v16 = vld [vmem:[#allocation14 + $0x20] sm:$0xff] }
 0x2de   :  { %1906 = vmatpush.bf16.msrb.mxu2 %v2403_v16  ;;  %v2401_v16 = vld [vmem:[#allocation14 + $0x10] sm:$0xff] }
 0x2df   :  { %1521 = vmatmul.bf16.gmra.mxu0 %v1413_v24 }
 0x2e0   :  { %v1322_v18 = vpop.f32.mrf.mxu3 }
 0x2e1   :  { %v1323_v34 = vadd.f32 %v1322_v18, %v1234_v55  ;;  %v1253_v27 = vpop.f32.mrf.mxu2 }
 0x2e2   :  { %v1254_v49 = vadd.f32 %v3881_v46, %v1253_v27 }
 0x2e3   :  { %v1387_v35 = vmax.f32 %v1323_v34, 0.0 }
 0x2e8   :  { %v1324_v53 = vpop.f32.mrf.mxu3 }
 0x2e9   :  { %v1325_v30 = vadd.f32 %v1324_v53, %v1236_v43  ;;  %v1255_v19 = vpop.f32.mrf.mxu2 }
 0x2ea   :  { %v1256_v43 = vadd.f32 %v3881_v46, %v1255_v19 }
 0x2eb   :  { %v1388_v45 = vmax.f32 %v1325_v30, 0.0 }
 0x2ed   :  { %v1414_v4 = vpack.c.bf16 %v1388_v45, %v1387_v35  ;;  %1366 = vmatmul.bf16.gmra.mxu3 %v4178_v54 }
 0x2ef   :  { %1526 = vmatmul.bf16.gmra.mxu0 %v1414_v4 }
 0x2f0   :  { %v1327_v50 = vpop.f32.mrf.mxu3 }
 0x2f1   :  { %v1328_v2 = vadd.f32 %v1327_v50, %v1239_v38  ;;  %v1258_v55 = vpop.f32.mrf.mxu2 }
 0x2f3   :  { %v1389_v40 = vmax.f32 %v1328_v2, 0.0 }
 0x2f8   :  { %v1329_v59 = vpop.f32.mrf.mxu3 }
 0x2f9   :  { %v1330_v26 = vadd.f32 %v1329_v59, %v1241_v17  ;;  %v1260_v50 = vpop.f32.mrf.mxu2  ;;  %v1259_v17 = vadd.f32 %v3881_v46, %v1258_v55  ;;  %v1271_v55 = vadd.f32 %v3881_v46, %v3843_v0 }
 0x2fa   :  { %v1261_v59 = vadd.f32 %v3881_v46, %v1260_v50 }
 0x2fb   :  { %v1390_v58 = vmax.f32 %v1330_v26, 0.0 }
 0x2fd   :  { %v1415_v44 = vpack.c.bf16 %v1390_v58, %v1389_v40  ;;  %1371 = vmatmul.bf16.gmra.mxu3 %v4179_v15 }
 0x2ff   :  { %1531 = vmatmul.bf16.gmra.mxu0 %v1415_v44  ;;  %v2402_v44 = vld [vmem:[#allocation14 + $0x18] sm:$0xff] }
 0x300   :  { %v1332_v51 = vpop.f32.mrf.mxu3  ;;  %1907 = vmatpush.bf16.msrb.mxu2 %v2402_v44 }
 0x301   :  { %v1333_v62 = vadd.f32 %v1332_v51, %v1244_v61  ;;  %v1263_v61 = vpop.f32.mrf.mxu2 }
 0x303   :  { %v1391_v6 = vmax.f32 %v1333_v62, 0.0 }
 0x304   :  { %1908 = vmatpush.bf16.msrb.mxu2 %v2401_v16 }
 0x308   :  { %v1334_v60 = vpop.f32.mrf.mxu3 }
 0x309   :  { %v1335_v42 = vadd.f32 %v1334_v60, %v1246_v1 }
 0x30b   :  { %v1392_v37 = vmax.f32 %v1335_v42, 0.0 }
 0x30d   :  { %v1416_v56 = vpack.c.bf16 %v1392_v37, %v1391_v6  ;;  %v1265_v6 = vpop.f32.mrf.mxu2 }
 0x30e   :  { %v1266_v27 = vadd.f32 %v3881_v46, %v1265_v6 }
 0x30f   :  { %1536 = vmatmul.bf16.gmra.mxu0 %v1416_v56  ;;  %v1264_v56 = vadd.f32 %v3881_v46, %v1263_v61 }
 0x310   :  { %v1337_v22 = vpop.f32.mrf.mxu3 }
 0x311   :  { %v1338_v47 = vadd.f32 %v1337_v22, %v1249_v13 }
 0x313   :  { %v1393_v3 = vmax.f32 %v1338_v47, 0.0 }
 0x318   :  { %v1339_v52 = vpop.f32.mrf.mxu3 }
 0x319   :  { %v1340_v20 = vadd.f32 %v1339_v52, %v1251_v7 }
 0x31b   :  { %v1394_v36 = vmax.f32 %v1340_v20, 0.0 }
 0x31c   :  { %v1502_v23 = vpop.f32.mrf.mxu0 }
 0x31d   :  { %v1417_v11 = vpack.c.bf16 %v1394_v36, %v1393_v3  ;;  %v1503_v8 = vadd.f32 %v3925_v28, %v1502_v23 }
 0x31f   :  { %1541 = vmatmul.bf16.gmra.mxu0 %v1417_v11  ;;  %v1582_v34 = vmax.f32 %v1503_v8, 0.0 }
 0x320   :  { %v1342_v24 = vpop.f32.mrf.mxu3 }
 0x321   :  { %v1343_v53 = vadd.f32 %v1342_v24, %v1254_v49  ;;  %v1269_v49 = vadd.f32 %v3881_v46, %v3841_v21 }
 0x323   :  { %v1395_v4 = vmax.f32 %v1343_v53, 0.0 }
 0x324   :  { %v1504_v48 = vpop.f32.mrf.mxu0 }
 0x325   :  { %v1505_v18 = vadd.f32 %v3925_v28, %v1504_v48 }
 0x327   :  { %v1583_v30 = vmax.f32 %v1505_v18, 0.0 }
 0x328   :  { %v1344_v41 = vpop.f32.mrf.mxu3 }
 0x329   :  { %v1614_v35 = vpack.c.bf16 %v1583_v30, %v1582_v34  ;;  %v1345_v45 = vadd.f32 %v1344_v41, %v1256_v43 }
 0x32b   :  { %v1396_v32 = vmax.f32 %v1345_v45, 0.0  ;;  %1706 = vmatmul.bf16.vlgmr.msrb.gmra.mxu1 %v1614_v35 }
 0x32c   :  { %v1507_v54 = vpop.f32.mrf.mxu0 }
 0x32d   :  { %v1418_v33 = vpack.c.bf16 %v1396_v32, %v1395_v4  ;;  %v1508_v31 = vadd.f32 %v3925_v28, %v1507_v54 }
 0x32f   :  { %1546 = vmatmul.bf16.gmra.mxu0 %v1418_v33  ;;  %v1584_v26 = vmax.f32 %v1508_v31, 0.0  ;;  %v1276_v31 = vadd.f32 %v3881_v46, %v3853_v10  ;;  %v1279_v10 = vadd.f32 %v3881_v46, %v3861_v63 }
 0x330   :  { %v1347_v14 = vpop.f32.mrf.mxu3 }
 0x331   :  { %v1348_v40 = vadd.f32 %v1347_v14, %v1259_v17  ;;  %v1274_v14 = vadd.f32 %v3881_v46, %v3851_v12 }
 0x333   :  { %v1397_v1 = vmax.f32 %v1348_v40, 0.0 }
 0x334   :  { %v1509_v38 = vpop.f32.mrf.mxu0 }
 0x335   :  { %v1510_v2 = vadd.f32 %v3925_v28, %v1509_v38 }
 0x337   :  { %v1585_v58 = vmax.f32 %v1510_v2, 0.0 }
 0x338   :  { %v1349_v15 = vpop.f32.mrf.mxu3 }
 0x339   :  { %v1350_v57 = vadd.f32 %v1349_v15, %v1261_v59  ;;  %v1615_v51 = vpack.c.bf16 %v1585_v58, %v1584_v26  ;;  %v2400_v58 = vld [vmem:[#allocation14 + $0x8] sm:$0xff] }
 0x33a   :  { %1909 = vmatpush.bf16.msrb.mxu2 %v2400_v58 }
 0x33b   :  { %v1398_v62 = vmax.f32 %v1350_v57, 0.0  ;;  %1711 = vmatmul.bf16.gmra.mxu1 %v1615_v51 }
 0x33c   :  { %v1512_v25 = vpop.f32.mrf.mxu0 }
 0x33d   :  { %v1419_v60 = vpack.c.bf16 %v1398_v62, %v1397_v1  ;;  %v1513_v39 = vadd.f32 %v3925_v28, %v1512_v25  ;;  %v1281_v25 = vadd.f32 %v3881_v46, %v3863_v9  ;;  %v1284_v9 = vadd.f32 %v3881_v46, %v3871_v29 }
 0x33f   :  { %1551 = vmatmul.bf16.gmra.mxu0 %v1419_v60  ;;  %v1586_v13 = vmax.f32 %v1513_v39, 0.0 }
 0x340   :  { %v1352_v42 = vpop.f32.mrf.mxu3 }
 0x341   :  { %v1353_v7 = vadd.f32 %v1352_v42, %v1264_v56 }
 0x343   :  { %v1399_v36 = vmax.f32 %v1353_v7, 0.0 }
 0x344   :  { %v1514_v37 = vpop.f32.mrf.mxu0 }
 0x345   :  { %v1515_v22 = vadd.f32 %v3925_v28, %v1514_v37 }
 0x347   :  { %v1587_v47 = vmax.f32 %v1515_v22, 0.0 }
 0x348   :  { %v1354_v52 = vpop.f32.mrf.mxu3 }
 0x349   :  { %v1355_v20 = vadd.f32 %v1354_v52, %v1266_v27  ;;  %v1616_v3 = vpack.c.bf16 %v1587_v47, %v1586_v13  ;;  %v2399_v47 = vld [vmem:[#allocation14] sm:$0xff] }
 0x34a   :  { %1910 = vmatpush.bf16.msrb.mxu2 %v2399_v47 }
 0x34b   :  { %v1400_v19 = vmax.f32 %v1355_v20, 0.0  ;;  %1716 = vmatmul.bf16.gmra.mxu1 %v1616_v3 }
 0x34c   :  { %v1517_v23 = vpop.f32.mrf.mxu0 }
 0x34d   :  { %v1420_v11 = vpack.c.bf16 %v1400_v19, %v1399_v36  ;;  %v1518_v8 = vadd.f32 %v3925_v28, %v1517_v23  ;;  %v1286_v36 = vadd.f32 %v3881_v46, %v3873_v5 }
 0x34f   :  { %1556 = vmatmul.bf16.gmra.mxu0 %v1420_v11  ;;  %v1588_v43 = vmax.f32 %v1518_v8, 0.0 }
 0x350   :  { %v1357_v24 = vpop.f32.mrf.mxu3 }
 0x351   :  { %v1358_v34 = vadd.f32 %v1357_v24, %v1269_v49 }
 0x353   :  { %v1401_v45 = vmax.f32 %v1358_v34, 0.0 }
 0x354   :  { %v1519_v48 = vpop.f32.mrf.mxu0 }
 0x355   :  { %v1520_v18 = vadd.f32 %v3925_v28, %v1519_v48 }
 0x357   :  { %v1589_v53 = vmax.f32 %v1520_v18, 0.0 }
 0x358   :  { %v1359_v30 = vpop.f32.mrf.mxu3 }
 0x359   :  { %v1360_v41 = vadd.f32 %v1359_v30, %v1271_v55  ;;  %v1617_v35 = vpack.c.bf16 %v1589_v53, %v1588_v43 }
 0x35b   :  { %v1402_v4 = vmax.f32 %v1360_v41, 0.0  ;;  %1721 = vmatmul.bf16.gmra.mxu1 %v1617_v35 }
 0x35c   :  { %v1522_v32 = vpop.f32.mrf.mxu0 }
 0x35d   :  { %v1421_v54 = vpack.c.bf16 %v1402_v4, %v1401_v45  ;;  %v1523_v21 = vadd.f32 %v3925_v28, %v1522_v32 }
 0x35f   :  { %1561 = vmatmul.bf16.gmra.mxu0 %v1421_v54  ;;  %v1590_v38 = vmax.f32 %v1523_v21, 0.0  ;;  %v3970_v21 = vld [vmem:[%s4071_s10] ss:$0 sm:$0xff] }
 0x360   :  { %v1362_v33 = vpop.f32.mrf.mxu3 }
 0x361   :  { %v1363_v17 = vadd.f32 %v1362_v33, %v1274_v14 }
 0x363   :  { %v1403_v44 = vmax.f32 %v1363_v17, 0.0 }
 0x364   :  { %v1524_v50 = vpop.f32.mrf.mxu0 }
 0x365   :  { %v1525_v0 = vadd.f32 %v3925_v28, %v1524_v50 }
 0x367   :  { %v1591_v2 = vmax.f32 %v1525_v0, 0.0 }
 0x368   :  { %v1364_v59 = vpop.f32.mrf.mxu3 }
 0x369   :  { %v1618_v26 = vpack.c.bf16 %v1591_v2, %v1590_v38  ;;  %v1365_v40 = vadd.f32 %v1364_v59, %v1276_v31 }
 0x36b   :  { %v1404_v15 = vmax.f32 %v1365_v40, 0.0  ;;  %1726 = vmatmul.bf16.gmra.mxu1 %v1618_v26 }
 0x36c   :  { %v1527_v57 = vpop.f32.mrf.mxu0 }
 0x36d   :  { %v1422_v51 = vpack.c.bf16 %v1404_v15, %v1403_v44  ;;  %v1528_v61 = vadd.f32 %v3925_v28, %v1527_v57 }
 0x36f   :  { %1566 = vmatmul.bf16.gmra.mxu0 %v1422_v51  ;;  %v1592_v60 = vmax.f32 %v1528_v61, 0.0 }
 0x370   :  { %v1367_v12 = vpop.f32.mrf.mxu3 }
 0x371   :  { %v1368_v42 = vadd.f32 %v1367_v12, %v1279_v10 }
 0x373   :  { %v1405_v22 = vmax.f32 %v1368_v42, 0.0 }
 0x374   :  { %v1529_v1 = vpop.f32.mrf.mxu0 }
 0x375   :  { %v1530_v62 = vadd.f32 %v3925_v28, %v1529_v1 }
 0x377   :  { %v1593_v39 = vmax.f32 %v1530_v62, 0.0 }
 0x378   :  { %v1369_v6 = vpop.f32.mrf.mxu3 }
 0x379   :  { %v1619_v37 = vpack.c.bf16 %v1593_v39, %v1592_v60  ;;  %v1370_v56 = vadd.f32 %v1369_v6, %v1281_v25 }
 0x37b   :  { %v1406_v27 = vmax.f32 %v1370_v56, 0.0  ;;  %1731 = vmatmul.bf16.gmra.mxu1 %v1619_v37 }
 0x37c   :  { %v1532_v13 = vpop.f32.mrf.mxu0 }
 0x37d   :  { %v1423_v7 = vpack.c.bf16 %v1406_v27, %v1405_v22  ;;  %v1533_v63 = vadd.f32 %v3925_v28, %v1532_v13 }
 0x37f   :  { %1571 = vmatmul.bf16.gmra.mxu0 %v1423_v7  ;;  %v1594_v19 = vmax.f32 %v1533_v63, 0.0 }
 0x380   :  { %v1372_v52 = vpop.f32.mrf.mxu3 }
 0x381   :  { %v1373_v23 = vadd.f32 %v1372_v52, %v1284_v9 }
 0x383   :  { %v1407_v48 = vmax.f32 %v1373_v23, 0.0 }
 0x384   :  { %v1534_v20 = vpop.f32.mrf.mxu0 }
 0x385   :  { %v1535_v3 = vadd.f32 %v3925_v28, %v1534_v20 }
 0x387   :  { %v1595_v11 = vmax.f32 %v1535_v3, 0.0 }
 0x388   :  { %v1374_v16 = vpop.f32.mrf.mxu3 }
 0x389   :  { %v1620_v24 = vpack.c.bf16 %v1595_v11, %v1594_v19  ;;  %v1375_v8 = vadd.f32 %v1374_v16, %v1286_v36 }
 0x38b   :  { %v1408_v49 = vmax.f32 %v1375_v8, 0.0  ;;  %1736 = vmatmul.bf16.gmra.mxu1 %v1620_v24 }
 0x38c   :  { %v1537_v18 = vpop.f32.mrf.mxu0 }
 0x38d   :  { %v1424_v55 = vpack.c.bf16 %v1408_v49, %v1407_v48  ;;  %v1538_v43 = vadd.f32 %v3925_v28, %v1537_v18 }
 0x38f   :  { %1576 = vmatmul.bf16.gmra.mxu0 %v1424_v55  ;;  %v1596_v53 = vmax.f32 %v1538_v43, 0.0 }
 0x394   :  { %v1539_v29 = vpop.f32.mrf.mxu0 }
 0x395   :  { %v1540_v34 = vadd.f32 %v3925_v28, %v1539_v29 }
 0x397   :  { %v1597_v30 = vmax.f32 %v1540_v34, 0.0 }
 0x399   :  { %v1621_v5 = vpack.c.bf16 %v1597_v30, %v1596_v53 }
 0x39b   :  { %1741 = vmatmul.bf16.gmra.mxu1 %v1621_v5 }
 0x39c   :  { %v1542_v46 = vpop.f32.mrf.mxu0 }
 0x39d   :  { %v1543_v41 = vadd.f32 %v3925_v28, %v1542_v46 }
 0x39f   :  { %v1598_v4 = vmax.f32 %v1543_v41, 0.0 }
 0x3a4   :  { %v1544_v35 = vpop.f32.mrf.mxu0 }
 0x3a5   :  { %v1545_v45 = vadd.f32 %v3925_v28, %v1544_v35 }
 0x3a7   :  { %v1599_v32 = vmax.f32 %v1545_v45, 0.0 }
 0x3a8   :  { %v1707_v54 = vpop.f32.mrf.mxu1 }
 0x3a9   :  { %v1622_v33 = vpack.c.bf16 %v1599_v32, %v1598_v4  ;;  %v1708_v14 = vadd.f32 %v3970_v21, %v1707_v54 }
 0x3ab   :  { %1746 = vmatmul.bf16.gmra.mxu1 %v1622_v33  ;;  %v1787_v38 = vmax.f32 %v1708_v14, 0.0 }
 0x3ac   :  { %v1547_v50 = vpop.f32.mrf.mxu0 }
 0x3ad   :  { %v1548_v17 = vadd.f32 %v3925_v28, %v1547_v50 }
 0x3af   :  { %v1600_v58 = vmax.f32 %v1548_v17, 0.0 }
 0x3b0   :  { %v1709_v0 = vpop.f32.mrf.mxu1 }
 0x3b1   :  { %v1710_v31 = vadd.f32 %v3970_v21, %v1709_v0 }
 0x3b3   :  { %v1788_v2 = vmax.f32 %v1710_v31, 0.0 }
 0x3b4   :  { %v1549_v59 = vpop.f32.mrf.mxu0 }
 0x3b5   :  { %v1819_v26 = vpack.c.bf16 %v1788_v2, %v1787_v38  ;;  %v1550_v40 = vadd.f32 %v3925_v28, %v1549_v59 }
 0x3b7   :  { %v1601_v44 = vmax.f32 %v1550_v40, 0.0  ;;  %1911 = vmatmul.bf16.vlgmr.msrb.gmra.mxu2 %v1819_v26 }
 0x3b8   :  { %v1712_v15 = vpop.f32.mrf.mxu1 }
 0x3b9   :  { %v1623_v57 = vpack.c.bf16 %v1601_v44, %v1600_v58  ;;  %v1713_v12 = vadd.f32 %v3970_v21, %v1712_v15 }
 0x3bb   :  { %1751 = vmatmul.bf16.gmra.mxu1 %v1623_v57  ;;  %v1789_v10 = vmax.f32 %v1713_v12, 0.0 }
 0x3bc   :  { %v1552_v51 = vpop.f32.mrf.mxu0 }
 0x3bd   :  { %v1553_v62 = vadd.f32 %v3925_v28, %v1552_v51 }
 0x3bf   :  { %v1602_v6 = vmax.f32 %v1553_v62, 0.0 }
 0x3c0   :  { %v1714_v61 = vpop.f32.mrf.mxu1 }
 0x3c1   :  { %v1715_v1 = vadd.f32 %v3970_v21, %v1714_v61 }
 0x3c3   :  { %v1790_v25 = vmax.f32 %v1715_v1, 0.0 }
 0x3c4   :  { %v1554_v60 = vpop.f32.mrf.mxu0 }
 0x3c5   :  { %v1555_v42 = vadd.f32 %v3925_v28, %v1554_v60  ;;  %v1820_v39 = vpack.c.bf16 %v1790_v25, %v1789_v10 }
 0x3c7   :  { %v1603_v37 = vmax.f32 %v1555_v42, 0.0  ;;  %1916 = vmatmul.bf16.gmra.mxu2 %v1820_v39 }
 0x3c8   :  { %v1717_v56 = vpop.f32.mrf.mxu1 }
 0x3c9   :  { %v1624_v22 = vpack.c.bf16 %v1603_v37, %v1602_v6  ;;  %v1718_v13 = vadd.f32 %v3970_v21, %v1717_v56 }
 0x3cb   :  { %1756 = vmatmul.bf16.gmra.mxu1 %v1624_v22  ;;  %v1791_v52 = vmax.f32 %v1718_v13, 0.0 }
 0x3cc   :  { %v1557_v27 = vpop.f32.mrf.mxu0 }
 0x3cd   :  { %v1558_v63 = vadd.f32 %v3925_v28, %v1557_v27 }
 0x3cf   :  { %v1604_v19 = vmax.f32 %v1558_v63, 0.0 }
 0x3d0   :  { %v1719_v7 = vpop.f32.mrf.mxu1 }
 0x3d1   :  { %v1720_v47 = vadd.f32 %v3970_v21, %v1719_v7 }
 0x3d3   :  { %v1792_v20 = vmax.f32 %v1720_v47, 0.0 }
 0x3d4   :  { %v1559_v9 = vpop.f32.mrf.mxu0 }
 0x3d5   :  { %v1560_v3 = vadd.f32 %v3925_v28, %v1559_v9  ;;  %v1821_v36 = vpack.c.bf16 %v1792_v20, %v1791_v52 }
 0x3d7   :  { %v1605_v23 = vmax.f32 %v1560_v3, 0.0  ;;  %1921 = vmatmul.bf16.gmra.mxu2 %v1821_v36 }
 0x3d8   :  { %v1722_v11 = vpop.f32.mrf.mxu1 }
 0x3d9   :  { %v1625_v16 = vpack.c.bf16 %v1605_v23, %v1604_v19  ;;  %v1723_v8 = vadd.f32 %v3970_v21, %v1722_v11 }
 0x3db   :  { %1761 = vmatmul.bf16.gmra.mxu1 %v1625_v16  ;;  %v1793_v18 = vmax.f32 %v1723_v8, 0.0 }
 0x3dc   :  { %v1562_v24 = vpop.f32.mrf.mxu0 }
 0x3dd   :  { %v1563_v55 = vadd.f32 %v3925_v28, %v1562_v24 }
 0x3df   :  { %v1606_v30 = vmax.f32 %v1563_v55, 0.0 }
 0x3e0   :  { %v1724_v48 = vpop.f32.mrf.mxu1 }
 0x3e1   :  { %v1725_v49 = vadd.f32 %v3970_v21, %v1724_v48 }
 0x3e3   :  { %v1794_v43 = vmax.f32 %v1725_v49, 0.0 }
 0x3e4   :  { %v1564_v29 = vpop.f32.mrf.mxu0 }
 0x3e5   :  { %v1565_v34 = vadd.f32 %v3925_v28, %v1564_v29  ;;  %v1822_v53 = vpack.c.bf16 %v1794_v43, %v1793_v18  ;;  %v4007_v43 = vld [vmem:[%s4073_s12] ss:$0 sm:$0xff]  ;;  %s2692_s12 = smov [#allocation16]  }
 0x3e6   :  { %s2028_s0 = sshll.u32 %s2692_s12, 4  ;;  %s2029_s0 = int_to_ptr.vmem [resolvable:$true] %s2028_s0 }
 0x3e7   :  { %v1607_v5 = vmax.f32 %v1565_v34, 0.0  ;;  %1926 = vmatmul.bf16.gmra.mxu2 %v1822_v53 }
 0x3e8   :  { %v1727_v46 = vpop.f32.mrf.mxu1 }
 0x3e9   :  { %v1626_v41 = vpack.c.bf16 %v1607_v5, %v1606_v30  ;;  %v1728_v45 = vadd.f32 %v3970_v21, %v1727_v46 }
 0x3eb   :  { %1766 = vmatmul.bf16.gmra.mxu1 %v1626_v41  ;;  %v1795_v54 = vmax.f32 %v1728_v45, 0.0 }
 0x3ec   :  { %v1567_v35 = vpop.f32.mrf.mxu0 }
 0x3ed   :  { %v1568_v33 = vadd.f32 %v3925_v28, %v1567_v35 }
 0x3ef   :  { %v1608_v38 = vmax.f32 %v1568_v33, 0.0 }
 0x3f0   :  { %v1729_v4 = vpop.f32.mrf.mxu1 }
 0x3f1   :  { %v1730_v32 = vadd.f32 %v3970_v21, %v1729_v4 }
 0x3f3   :  { %v1796_v50 = vmax.f32 %v1730_v32, 0.0 }
 0x3f4   :  { %v1569_v14 = vpop.f32.mrf.mxu0 }
 0x3f5   :  { %v1823_v0 = vpack.c.bf16 %v1796_v50, %v1795_v54  ;;  %v1570_v31 = vadd.f32 %v3925_v28, %v1569_v14 }
 0x3f7   :  { %v1609_v17 = vmax.f32 %v1570_v31, 0.0  ;;  %1931 = vmatmul.bf16.gmra.mxu2 %v1823_v0 }
 0x3f8   :  { %v1732_v2 = vpop.f32.mrf.mxu1 }
 0x3f9   :  { %v1627_v59 = vpack.c.bf16 %v1609_v17, %v1608_v38  ;;  %v1733_v40 = vadd.f32 %v3970_v21, %v1732_v2 }
 0x3fb   :  { %1771 = vmatmul.bf16.gmra.mxu1 %v1627_v59  ;;  %v1797_v15 = vmax.f32 %v1733_v40, 0.0 }
 0x3fc   :  { %v1572_v26 = vpop.f32.mrf.mxu0 }
 0x3fd   :  { %v1573_v57 = vadd.f32 %v3925_v28, %v1572_v26 }
 0x3ff   :  { %v1610_v10 = vmax.f32 %v1573_v57, 0.0 }
 0x400   :  { %v1734_v58 = vpop.f32.mrf.mxu1 }
 0x401   :  { %v1735_v44 = vadd.f32 %v3970_v21, %v1734_v58 }
 0x403   :  { %v1798_v51 = vmax.f32 %v1735_v44, 0.0 }
 0x404   :  { %v1574_v12 = vpop.f32.mrf.mxu0 }
 0x405   :  { %v1824_v61 = vpack.c.bf16 %v1798_v51, %v1797_v15  ;;  %v1575_v1 = vadd.f32 %v3925_v28, %v1574_v12 }
 0x407   :  { %v1611_v62 = vmax.f32 %v1575_v1, 0.0  ;;  %1936 = vmatmul.bf16.gmra.mxu2 %v1824_v61 }
 0x408   :  { %v1737_v25 = vpop.f32.mrf.mxu1 }
 0x409   :  { %v1628_v60 = vpack.c.bf16 %v1611_v62, %v1610_v10  ;;  %v1738_v39 = vadd.f32 %v3970_v21, %v1737_v25 }
 0x40b   :  { %1776 = vmatmul.bf16.gmra.mxu1 %v1628_v60  ;;  %v1799_v56 = vmax.f32 %v1738_v39, 0.0 }
 0x40c   :  { %v1577_v42 = vpop.f32.mrf.mxu0 }
 0x40d   :  { %v1578_v22 = vadd.f32 %v3925_v28, %v1577_v42 }
 0x40f   :  { %v1612_v52 = vmax.f32 %v1578_v22, 0.0 }
 0x410   :  { %v1739_v6 = vpop.f32.mrf.mxu1 }
 0x411   :  { %v1740_v37 = vadd.f32 %v3970_v21, %v1739_v6 }
 0x413   :  { %v1800_v27 = vmax.f32 %v1740_v37, 0.0 }
 0x414   :  { %v1579_v13 = vpop.f32.mrf.mxu0 }
 0x415   :  { %v1825_v7 = vpack.c.bf16 %v1800_v27, %v1799_v56  ;;  %v1580_v47 = vadd.f32 %v3925_v28, %v1579_v13 }
 0x417   :  { %v1613_v63 = vmax.f32 %v1580_v47, 0.0  ;;  %1941 = vmatmul.bf16.gmra.mxu2 %v1825_v7 }
 0x418   :  { %v1742_v20 = vpop.f32.mrf.mxu1 }
 0x419   :  { %v1629_v9 = vpack.c.bf16 %v1613_v63, %v1612_v52  ;;  %v1743_v3 = vadd.f32 %v3970_v21, %v1742_v20 }
 0x41b   :  { %1781 = vmatmul.bf16.gmra.mxu1 %v1629_v9  ;;  %v1801_v23 = vmax.f32 %v1743_v3, 0.0 }
 0x420   :  { %v1744_v36 = vpop.f32.mrf.mxu1 }
 0x421   :  { %v1745_v19 = vadd.f32 %v3970_v21, %v1744_v36 }
 0x423   :  { %v1802_v11 = vmax.f32 %v1745_v19, 0.0 }
 0x425   :  { %v1826_v16 = vpack.c.bf16 %v1802_v11, %v1801_v23 }
 0x427   :  { %1946 = vmatmul.bf16.gmra.mxu2 %v1826_v16 }
 0x428   :  { %v1747_v24 = vpop.f32.mrf.mxu1 }
 0x429   :  { %v1748_v8 = vadd.f32 %v3970_v21, %v1747_v24 }
 0x42b   :  { %v1803_v49 = vmax.f32 %v1748_v8, 0.0 }
 0x430   :  { %v1749_v48 = vpop.f32.mrf.mxu1 }
 0x431   :  { %v1750_v28 = vadd.f32 %v3970_v21, %v1749_v48 }
 0x433   :  { %v1804_v18 = vmax.f32 %v1750_v28, 0.0 }
 0x435   :  { %v1827_v55 = vpack.c.bf16 %v1804_v18, %v1803_v49 }
 0x437   :  { %1951 = vmatmul.bf16.gmra.mxu2 %v1827_v55 }
 0x438   :  { %v1752_v29 = vpop.f32.mrf.mxu1 }
 0x439   :  { %v1753_v30 = vadd.f32 %v3970_v21, %v1752_v29 }
 0x43a   :  { %v1912_v34 = vpop.f32.mrf.mxu2 }
 0x43b   :  { %v1913_v53 = vadd.f32 %v4007_v43, %v1912_v34  ;;  %v1805_v35 = vmax.f32 %v1753_v30, 0.0 }
 0x43d   :  { %1992 = vst [vmem:[#allocation16] sm:$0xff] %v1913_v53 }
 0x440   :  { %v1754_v5 = vpop.f32.mrf.mxu1 }
 0x441   :  { %v1755_v46 = vadd.f32 %v3970_v21, %v1754_v5 }
 0x442   :  { %v1914_v41 = vpop.f32.mrf.mxu2 }
 0x443   :  { %v1806_v45 = vmax.f32 %v1755_v46, 0.0  ;;  %v1915_v4 = vadd.f32 %v4007_v43, %v1914_v41 }
 0x445   :  { %v1828_v32 = vpack.c.bf16 %v1806_v45, %v1805_v35  ;;  %1993 = vst [vmem:[#allocation16 + $0x8] sm:$0xff] %v1915_v4 }
 0x447   :  { %1956 = vmatmul.bf16.gmra.mxu2 %v1828_v32 }
 0x448   :  { %v1757_v54 = vpop.f32.mrf.mxu1 }
 0x449   :  { %v1758_v14 = vadd.f32 %v3970_v21, %v1757_v54 }
 0x44a   :  { %v1917_v33 = vpop.f32.mrf.mxu2 }
 0x44b   :  { %v1918_v50 = vadd.f32 %v4007_v43, %v1917_v33  ;;  %v1807_v17 = vmax.f32 %v1758_v14, 0.0 }
 0x44d   :  { %1994 = vst [vmem:[#allocation16 + $0x10] sm:$0xff] %v1918_v50 }
 0x450   :  { %v1759_v0 = vpop.f32.mrf.mxu1 }
 0x451   :  { %v1760_v31 = vadd.f32 %v3970_v21, %v1759_v0 }
 0x452   :  { %v1919_v38 = vpop.f32.mrf.mxu2 }
 0x453   :  { %v1808_v2 = vmax.f32 %v1760_v31, 0.0  ;;  %v1920_v59 = vadd.f32 %v4007_v43, %v1919_v38 }
 0x455   :  { %v1829_v26 = vpack.c.bf16 %v1808_v2, %v1807_v17  ;;  %1995 = vst [vmem:[#allocation16 + $0x18] sm:$0xff] %v1920_v59 }
 0x457   :  { %1961 = vmatmul.bf16.gmra.mxu2 %v1829_v26 }
 0x458   :  { %v1762_v40 = vpop.f32.mrf.mxu1 }
 0x459   :  { %v1763_v15 = vadd.f32 %v3970_v21, %v1762_v40 }
 0x45a   :  { %v1922_v58 = vpop.f32.mrf.mxu2 }
 0x45b   :  { %v1923_v44 = vadd.f32 %v4007_v43, %v1922_v58  ;;  %v1809_v61 = vmax.f32 %v1763_v15, 0.0 }
 0x45d   :  { %1996 = vst [vmem:[#allocation16 + $0x20] sm:$0xff] %v1923_v44 }
 0x460   :  { %v1764_v57 = vpop.f32.mrf.mxu1 }
 0x461   :  { %v1765_v51 = vadd.f32 %v3970_v21, %v1764_v57 }
 0x462   :  { %v1924_v12 = vpop.f32.mrf.mxu2 }
 0x463   :  { %v1810_v1 = vmax.f32 %v1765_v51, 0.0  ;;  %v1925_v10 = vadd.f32 %v4007_v43, %v1924_v12 }
 0x465   :  { %v1830_v62 = vpack.c.bf16 %v1810_v1, %v1809_v61  ;;  %1997 = vst [vmem:[#allocation16 + $0x28] sm:$0xff] %v1925_v10 }
 0x467   :  { %1966 = vmatmul.bf16.gmra.mxu2 %v1830_v62 }
 0x468   :  { %v1767_v25 = vpop.f32.mrf.mxu1 }
 0x469   :  { %v1768_v39 = vadd.f32 %v3970_v21, %v1767_v25 }
 0x46a   :  { %v1927_v60 = vpop.f32.mrf.mxu2 }
 0x46b   :  { %v1928_v42 = vadd.f32 %v4007_v43, %v1927_v60  ;;  %v1811_v22 = vmax.f32 %v1768_v39, 0.0 }
 0x46d   :  { %1998 = vst [vmem:[#allocation16 + $0x30] sm:$0xff] %v1928_v42 }
 0x470   :  { %v1769_v6 = vpop.f32.mrf.mxu1 }
 0x471   :  { %v1770_v37 = vadd.f32 %v3970_v21, %v1769_v6 }
 0x472   :  { %v1929_v56 = vpop.f32.mrf.mxu2 }
 0x473   :  { %v1812_v27 = vmax.f32 %v1770_v37, 0.0  ;;  %v1930_v13 = vadd.f32 %v4007_v43, %v1929_v56 }
 0x475   :  { %v1831_v7 = vpack.c.bf16 %v1812_v27, %v1811_v22  ;;  %1999 = vst [vmem:[#allocation16 + $0x38] sm:$0xff] %v1930_v13 }
 0x477   :  { %1971 = vmatmul.bf16.gmra.mxu2 %v1831_v7 }
 0x478   :  { %v1772_v47 = vpop.f32.mrf.mxu1 }
 0x479   :  { %v1773_v20 = vadd.f32 %v3970_v21, %v1772_v47 }
 0x47a   :  { %v1932_v52 = vpop.f32.mrf.mxu2 }
 0x47b   :  { %v1933_v63 = vadd.f32 %v4007_v43, %v1932_v52  ;;  %v1813_v19 = vmax.f32 %v1773_v20, 0.0 }
 0x47d   :  { %2000 = vst [vmem:[#allocation16 + $0x40] sm:$0xff] %v1933_v63 }
 0x480   :  { %v1774_v9 = vpop.f32.mrf.mxu1 }
 0x481   :  { %v1775_v3 = vadd.f32 %v3970_v21, %v1774_v9 }
 0x482   :  { %v1934_v36 = vpop.f32.mrf.mxu2 }
 0x483   :  { %v1814_v23 = vmax.f32 %v1775_v3, 0.0  ;;  %v1935_v11 = vadd.f32 %v4007_v43, %v1934_v36 }
 0x485   :  { %v1832_v16 = vpack.c.bf16 %v1814_v23, %v1813_v19  ;;  %2001 = vst [vmem:[#allocation16 + $0x48] sm:$0xff] %v1935_v11 }
 0x487   :  { %1976 = vmatmul.bf16.gmra.mxu2 %v1832_v16 }
 0x488   :  { %v1777_v24 = vpop.f32.mrf.mxu1 }
 0x489   :  { %v1778_v28 = vadd.f32 %v3970_v21, %v1777_v24 }
 0x48a   :  { %v1937_v8 = vpop.f32.mrf.mxu2 }
 0x48b   :  { %v1938_v48 = vadd.f32 %v4007_v43, %v1937_v8  ;;  %v1815_v29 = vmax.f32 %v1778_v28, 0.0 }
 0x48d   :  { %2002 = vst [vmem:[#allocation16 + $0x50] sm:$0xff] %v1938_v48 }
 0x490   :  { %v1779_v49 = vpop.f32.mrf.mxu1 }
 0x491   :  { %v1780_v18 = vadd.f32 %v3970_v21, %v1779_v49 }
 0x492   :  { %v1939_v55 = vpop.f32.mrf.mxu2 }
 0x493   :  { %v1816_v34 = vmax.f32 %v1780_v18, 0.0  ;;  %v1940_v53 = vadd.f32 %v4007_v43, %v1939_v55 }
 0x495   :  { %v1833_v30 = vpack.c.bf16 %v1816_v34, %v1815_v29  ;;  %2003 = vst [vmem:[#allocation16 + $0x58] sm:$0xff] %v1940_v53 }
 0x497   :  { %1981 = vmatmul.bf16.gmra.mxu2 %v1833_v30 }
 0x498   :  { %v1782_v5 = vpop.f32.mrf.mxu1 }
 0x499   :  { %v1783_v35 = vadd.f32 %v3970_v21, %v1782_v5 }
 0x49a   :  { %v1942_v46 = vpop.f32.mrf.mxu2 }
 0x49b   :  { %v1943_v41 = vadd.f32 %v4007_v43, %v1942_v46  ;;  %v1817_v54 = vmax.f32 %v1783_v35, 0.0 }
 0x49d   :  { %2004 = vst [vmem:[#allocation16 + $0x60] sm:$0xff] %v1943_v41 }
 0x4a0   :  { %v1784_v45 = vpop.f32.mrf.mxu1 }
 0x4a1   :  { %v1785_v4 = vadd.f32 %v3970_v21, %v1784_v45 }
 0x4a2   :  { %v1944_v32 = vpop.f32.mrf.mxu2 }
 0x4a3   :  { %v1818_v33 = vmax.f32 %v1785_v4, 0.0  ;;  %v1945_v50 = vadd.f32 %v4007_v43, %v1944_v32 }
 0x4a5   :  { %v1834_v14 = vpack.c.bf16 %v1818_v33, %v1817_v54  ;;  %2005 = vst [vmem:[#allocation16 + $0x68] sm:$0xff] %v1945_v50 }
 0x4a7   :  { %1986 = vmatmul.bf16.gmra.mxu2 %v1834_v14 }
 0x4aa   :  { %v1947_v0 = vpop.f32.mrf.mxu2 }
 0x4ab   :  { %v1948_v31 = vadd.f32 %v4007_v43, %v1947_v0 }
 0x4ad   :  { %2006 = vst [vmem:[#allocation16 + $0x70] sm:$0xff] %v1948_v31 }
 0x4b2   :  { %v1949_v38 = vpop.f32.mrf.mxu2 }
 0x4b3   :  { %v1950_v17 = vadd.f32 %v4007_v43, %v1949_v38 }
 0x4b5   :  { %2007 = vst [vmem:[#allocation16 + $0x78] sm:$0xff] %v1950_v17 }
 0x4ba   :  { %v1952_v2 = vpop.f32.mrf.mxu2 }
 0x4bb   :  { %v1953_v59 = vadd.f32 %v4007_v43, %v1952_v2 }
 0x4bd   :  { %2008 = vst [vmem:[#allocation16 + $0x80] sm:$0xff] %v1953_v59 }
 0x4c2   :  { %v1954_v21 = vpop.f32.mrf.mxu2 }
 0x4c3   :  { %v1955_v26 = vadd.f32 %v4007_v43, %v1954_v21 }
 0x4c5   :  { %2009 = vst [vmem:[#allocation16 + $0x88] sm:$0xff] %v1955_v26 }
 0x4ca   :  { %v1957_v40 = vpop.f32.mrf.mxu2 }
 0x4cb   :  { %v1958_v58 = vadd.f32 %v4007_v43, %v1957_v40 }
 0x4cd   :  { %2010 = vst [vmem:[#allocation16 + $0x90] sm:$0xff] %v1958_v58 }
 0x4d2   :  { %v1959_v44 = vpop.f32.mrf.mxu2 }
 0x4d3   :  { %v1960_v15 = vadd.f32 %v4007_v43, %v1959_v44 }
 0x4d5   :  { %2011 = vst [vmem:[#allocation16 + $0x98] sm:$0xff] %v1960_v15 }
 0x4da   :  { %v1962_v57 = vpop.f32.mrf.mxu2 }
 0x4db   :  { %v1963_v51 = vadd.f32 %v4007_v43, %v1962_v57 }
 0x4dd   :  { %2012 = vst [vmem:[#allocation16 + $0xa0] sm:$0xff] %v1963_v51 }
 0x4e2   :  { %v1964_v12 = vpop.f32.mrf.mxu2 }
 0x4e3   :  { %v1965_v61 = vadd.f32 %v4007_v43, %v1964_v12 }
 0x4e5   :  { %2013 = vst [vmem:[#allocation16 + $0xa8] sm:$0xff] %v1965_v61 }
 0x4ea   :  { %v1967_v1 = vpop.f32.mrf.mxu2 }
 0x4eb   :  { %v1968_v10 = vadd.f32 %v4007_v43, %v1967_v1 }
 0x4ed   :  { %2014 = vst [vmem:[#allocation16 + $0xb0] sm:$0xff] %v1968_v10 }
 0x4f2   :  { %v1969_v62 = vpop.f32.mrf.mxu2 }
 0x4f3   :  { %v1970_v25 = vadd.f32 %v4007_v43, %v1969_v62 }
 0x4f5   :  { %2015 = vst [vmem:[#allocation16 + $0xb8] sm:$0xff] %v1970_v25 }
 0x4fa   :  { %v1972_v60 = vpop.f32.mrf.mxu2 }
 0x4fb   :  { %v1973_v42 = vadd.f32 %v4007_v43, %v1972_v60 }
 0x4fd   :  { %2016 = vst [vmem:[#allocation16 + $0xc0] sm:$0xff] %v1973_v42 }
 0x502   :  { %v1974_v39 = vpop.f32.mrf.mxu2 }
 0x503   :  { %v1975_v6 = vadd.f32 %v4007_v43, %v1974_v39 }
 0x505   :  { %2017 = vst [vmem:[#allocation16 + $0xc8] sm:$0xff] %v1975_v6 }
 0x50a   :  { %v1977_v37 = vpop.f32.mrf.mxu2 }
 0x50b   :  { %v1978_v56 = vadd.f32 %v4007_v43, %v1977_v37 }
 0x50d   :  { %2018 = vst [vmem:[#allocation16 + $0xd0] sm:$0xff] %v1978_v56 }
 0x512   :  { %v1979_v22 = vpop.f32.mrf.mxu2 }
 0x513   :  { %v1980_v27 = vadd.f32 %v4007_v43, %v1979_v22 }
 0x515   :  { %2019 = vst [vmem:[#allocation16 + $0xd8] sm:$0xff] %v1980_v27 }
 0x51a   :  { %v1982_v13 = vpop.f32.mrf.mxu2 }
 0x51b   :  { %v1983_v7 = vadd.f32 %v4007_v43, %v1982_v13 }
 0x51d   :  { %2020 = vst [vmem:[#allocation16 + $0xe0] sm:$0xff] %v1983_v7 }
 0x522   :  { %v1984_v47 = vpop.f32.mrf.mxu2 }
 0x523   :  { %v1985_v52 = vadd.f32 %v4007_v43, %v1984_v47 }
 0x525   :  { %2021 = vst [vmem:[#allocation16 + $0xe8] sm:$0xff] %v1985_v52 }
 0x52a   :  { %v1987_v63 = vpop.f32.mrf.mxu2 }
 0x52b   :  { %v1988_v20 = vadd.f32 %v4007_v43, %v1987_v63 }
 0x52d   :  { %2022 = vst [vmem:[#allocation16 + $0xf0] sm:$0xff] %v1988_v20 }
 0x532   :  { %v1989_v9 = vpop.f32.mrf.mxu2 }
 0x533   :  { %v1990_v3 = vadd.f32 %v4007_v43, %v1989_v9 }
 0x535   :  { %2023 = vst [vmem:[#allocation16 + $0xf8] sm:$0xff] %v1990_v3 }
 0x536   :  { %2036 = dma.vmem_to_hbm [thread:$0]  %s2029_s0, 4096, %s2031_s19, [#allocation4], %s2681_s16, %s2681_s16, %s2682_s17  }
 0x537   :  { %2678 = dma.done.wait [#allocation4], 4096  }
 0x538   :  { %2679 = vsyncadd [#allocation4], 4294963200 }
 0x539   :  { %2041 = vsyncpa [#allocation3], 1 }
 0x53a   :  { %2042 = vsyncpa [#allocation6], 1 }
 0x53b   :  { %2043 = vsyncpa [#allocation9], 1 }
 0x53c   :  { %2044 = vsyncpa [#allocation12], 1 }
 0x53d   :  { %2045 = vsyncpa [#allocation15], 1 }
 0x53e   :  { %2046 = vsyncpa [#allocation4], 1 }

</bundles_post_ra>
